<compile_context>
chip_gen: v5e
topology: v5e:2x2
jax: 0.10.0
libtpu: 0.0.40
codegen_flags: <defaults>
</compile_context>

<pallas_src>
from functools import partial

import jax
import jax.numpy as jnp
from jax import lax
from jax.experimental import pallas as pl
from jax.experimental.pallas import tpu as pltpu


def _gelu_exact(x):
    # matches torch.nn.GELU() default (erf-based, not tanh approximation)
    return 0.5 * x * (1.0 + lax.erf(x * (2.0 ** -0.5)))


def _aggre_kernel(S, fold_ecfp, *refs):
    if fold_ecfp:
        (sm_ref, ecfp_ref, mz_ref, add_ref,
         w_ecfp_ref, w1_sm_ref,
         w_mz_fold_ref, w_add_fold_ref, b1_fold_ref,
         w2_ref, b2_ref, out_ref) = refs
        w1_ec_ref = None
    else:
        (sm_ref, ecfp_ref, mz_ref, add_ref,
         w_ecfp_ref, w1_ec_ref, w1_sm_ref,
         w_mz_fold_ref, w_add_fold_ref, b1_fold_ref,
         w2_ref, b2_ref, out_ref) = refs

    rows, D = sm_ref.shape          # rows = Bt * S, already flattened in HBM
    Bt = rows // S
    H = b1_fold_ref.shape[-1]       # 2*D
    cdt = w1_sm_ref.dtype           # MXU operand dtype (bf16)

    # ---- per-sample "extras" on the VPU (no tiny-M / tiny-K MXU launches) ---
    extras = mz_ref[...] * w_mz_fold_ref[...] + b1_fold_ref[...]        # (Bt, H)
    add = add_ref[...]                                                  # (Bt, A) f32
    for k in range(add.shape[-1]):                                      # A is tiny (=2), static
        extras = extras + add[:, k:k + 1] * w_add_fold_ref[k:k + 1, :]

    # ---- ecfp contribution (the remaining per-sample MXU matmul) ------------
    if fold_ecfp:
        extras = extras + jnp.dot(ecfp_ref[...], w_ecfp_ref[...],
                                  preferred_element_type=jnp.float32)   # (Bt, H)
    else:
        ecfp_e = jnp.dot(ecfp_ref[...], w_ecfp_ref[...],
                         preferred_element_type=jnp.float32)            # (Bt, D)
        extras = extras + jnp.dot(ecfp_e.astype(cdt), w1_ec_ref[...],
                                  preferred_element_type=jnp.float32)   # (Bt, H)

    # ---- aggregator layer 1: big-M matmul on the lane-dense 2-D block -------
    h = jnp.dot(sm_ref[...], w1_sm_ref[...],
                preferred_element_type=jnp.float32)                     # (Bt*S, H)
    # f32-intermediate-only reshape to broadcast per-sample extras over S.
    h = h.reshape(Bt, S, H) + extras[:, None, :]
    h = _gelu_exact(h).reshape(rows, H)

    # ---- aggregator layer 2 --------------------------------------------------
    o = jnp.dot(h.astype(cdt), w2_ref[...],
                preferred_element_type=jnp.float32) + b2_ref[...]       # (Bt*S, D)
    out_ref[...] = _gelu_exact(o).astype(out_ref.dtype)


def aggre_forward(smiles_emb, m_z, adduct, ecfp, params, *,
                  block_b=None, compute_dtype=jnp.bfloat16, out_dtype=None):
    """Pallas implementation of Aggre.forward."""
    B, S, D = smiles_emb.shape
    H = 2 * D
    ecfp_len = ecfp.shape[-1]
    A = params["adduct_table"].shape[-1]          # adduct_len
    out_dtype = smiles_emb.dtype if out_dtype is None else out_dtype
    f32 = jnp.float32
    cdt = compute_dtype

    fold_ecfp = D >= 512   # collapse the 2-stage ecfp projection only when FLOP-neutral/positive

    # ---- weight-only algebraic folding (exact, f32, done once) --------------
    w1 = params["w1"]
    w1_sm, w1_ec, w1_mz, w1_ad = w1[0:D], w1[D:2 * D], w1[2 * D:3 * D], w1[3 * D:4 * D]
    w_mz_fold = params["w_mz"] @ w1_mz                                   # (1, H)
    w_add_fold = params["w_add"] @ w1_ad                                 # (A, H)
    b1_fold = (params["b1"] + params["b_ecfp"] @ w1_ec
               + params["b_mz"] @ w1_mz + params["b_add"] @ w1_ad)       # (1, H)

    if fold_ecfp:
        ecfp_weights = [(params["w_ecfp"] @ w1_ec).astype(cdt)]          # (ecfp_len, H)
    else:
        ecfp_weights = [params["w_ecfp"].astype(cdt), w1_ec.astype(cdt)]
    weights = ecfp_weights + [
        w1_sm.astype(cdt),
        w_mz_fold.astype(f32), w_add_fold.astype(f32), b1_fold.astype(f32),
        params["w2"].astype(cdt), params["b2"].astype(f32),
    ]

    # ---- VMEM- and core-aware block sizing -----------------------------------
    try:
        vmem_cap = int(pltpu.get_tpu_info().vmem_capacity_bytes)
    except Exception:
        vmem_cap = 64 * 1024 * 1024               # conservative (v7x per-TensorCore)
    vmem_limit = int(min(vmem_cap * 3 // 4, 96 * 1024 * 1024))
    target_rows = 2048 if vmem_cap > 64 * 1024 * 1024 else 1024

    out_itemsize = jnp.dtype(out_dtype).itemsize
    weight_bytes = (ecfp_len * (H if fold_ecfp else D) * 2
                    + (0 if fold_ecfp else D * H * 2)
                    + D * H * 2 + H * D * 2
                    + (H + A * H + H + D) * 4)
    per_sample = (2 * S * D * 2                    # smiles bf16 stream (2 bufs)
                  + 2 * S * D * out_itemsize       # output stream (2 bufs)
                  + 2 * ecfp_len * 2 + 2 * (1 + A) * 4
                  + 2 * S * H * 4                  # f32 h intermediate (+headroom)
                  + 2 * S * D * 4)                 # f32 o intermediate (+headroom)
    budget = max(int(vmem_limit * 0.85) - weight_bytes, per_sample)
    vmem_bb = max(1, budget // per_sample)
    # TODO(synk): for extremely long S where even 8 samples exceed VMEM, an
    # S-tiled variant of the kernel would be needed; clamp to the 8-row floor.
    if block_b is None:
        want = max(1, target_rows // S)            # ~1-2K rows per layer-1 matmul
        block_b = max(8, min(want, vmem_bb))
        if block_b >= B and B >= 16 and B % 16 == 0:
            block_b = B // 2                       # keep >=2 steps for v7x's two TensorCores
    block_b = max(1, min(int(block_b), B))
    if block_b < B:
        # non-full blocks must be 8-aligned (prefer 16: bf16 sublane packing)
        block_b = (block_b // 16) * 16 if block_b >= 16 else (8 if block_b >= 8 else 0)
        if block_b == 0 or block_b >= B:
            block_b = B
    Bp = pl.cdiv(B, block_b) * block_b
    nb = Bp // block_b
    rows_blk = block_b * S

    # ---- glue: embedding gather, dtype casts, flatten, batch padding --------
    sm2d = smiles_emb.reshape(B * S, D).astype(cdt)        # free HBM reshape
    ec = ecfp.astype(cdt)
    mz = m_z.reshape(B, 1).astype(f32)
    ad = params["adduct_table"][adduct].astype(f32)        # (B, A)
    if Bp != B:
        pad = Bp - B
        sm2d = jnp.pad(sm2d, ((0, pad * S), (0, 0)))
        ec = jnp.pad(ec, ((0, pad), (0, 0)))
        mz = jnp.pad(mz, ((0, pad), (0, 0)))
        ad = jnp.pad(ad, ((0, pad), (0, 0)))

    sm_spec = pl.BlockSpec((rows_blk, D), lambda b: (b, 0))
    out_spec = pl.BlockSpec((rows_blk, D), lambda b: (b, 0))
    ec_spec = pl.BlockSpec((block_b, ecfp_len), lambda b: (b, 0))
    mz_spec = pl.BlockSpec((block_b, 1), lambda b: (b, 0))
    ad_spec = pl.BlockSpec((block_b, A), lambda b: (b, 0))

    kernel = partial(_aggre_kernel, S, fold_ecfp)

    def run(single_buffer_weights):
        if single_buffer_weights:
            wspec = lambda shape: pl.BlockSpec(shape, lambda b: (0,) * len(shape),
                                               pipeline_mode=pl.Buffered(1))
        else:
            wspec = lambda shape: pl.BlockSpec(shape, lambda b: (0,) * len(shape))
        return pl.pallas_call(
            kernel,
            out_shape=jax.ShapeDtypeStruct((Bp * S, D), out_dtype),
            grid=(nb,),
            in_specs=[sm_spec, ec_spec, mz_spec, ad_spec]
                     + [wspec(w.shape) for w in weights],
            out_specs=out_spec,
            compiler_params=pltpu.CompilerParams(
                dimension_semantics=("parallel",),
                vmem_limit_bytes=vmem_limit),
        )(sm2d, ec, mz, ad, *weights)

    try:
        out2d = run(True)          # invariant weights single-buffered in VMEM
    except Exception:
        out2d = run(False)         # fallback: jax without pipeline_mode support

    if Bp != B:
        out2d = out2d[:B * S]
    return out2d.reshape(B, S, D)


def aggre_reference(smiles_emb, m_z, adduct, ecfp, p):
    """Pure-JAX reference matching the PyTorch forward semantics."""
    S = smiles_emb.shape[1]
    add_e = p["adduct_table"][adduct]                       # (B, adduct_len)
    add_emb = add_e @ p["w_add"] + p["b_add"]               # (B, D)
    ecfp_emb = ecfp @ p["w_ecfp"] + p["b_ecfp"]             # (B, D)
    mz_emb = m_z[:, None] @ p["w_mz"] + p["b_mz"]           # (B, D)
    rep = lambda x: jnp.repeat(x[:, None, :], S, axis=1)
    combined = jnp.concatenate(
        [smiles_emb, rep(ecfp_emb), rep(mz_emb), rep(add_emb)], axis=-1)
    h = jax.nn.gelu(combined @ p["w1"] + p["b1"], approximate=False)
    return jax.nn.gelu(h @ p["w2"] + p["b2"], approximate=False)


def init_params(key, D, adduct_len=2, ecfp_len=1024, mz_len=1):
    ks = jax.random.split(key, 12)
    n = lambda k, shape, s=0.05: (s * jax.random.normal(k, shape)).astype(jnp.float32)
    return {
        "adduct_table": n(ks[0], (3, adduct_len), 1.0),
        "w_add": n(ks[1], (adduct_len, D)),
        "b_add": n(ks[2], (1, D)),
        "w_ecfp": n(ks[3], (ecfp_len, D)),
        "b_ecfp": n(ks[4], (1, D)),
        "w_mz": n(ks[5], (mz_len, D)),
        "b_mz": n(ks[6], (1, D)),
        "w1": n(ks[7], (4 * D, 2 * D)),
        "b1": n(ks[8], (1, 2 * D)),
        "w2": n(ks[9], (2 * D, D)),
        "b2": n(ks[10], (1, D)),
    }


if __name__ == "__main__":
    B, S, D = 2, 8, 32          # batch, seq, smiles_reflect_dim
    ecfp_len, adduct_len = 1024, 2

    key = jax.random.PRNGKey(0)
    k_par, k_sm, k_mz, k_ad, k_fp = jax.random.split(key, 5)

    params = init_params(k_par, D, adduct_len=adduct_len, ecfp_len=ecfp_len)

    smiles_emb = jax.random.normal(k_sm, (B, S, D), dtype=jnp.float32)
    m_z = jax.random.uniform(k_mz, (B,), minval=1.0, maxval=10.0, dtype=jnp.float32)
    adduct = jax.random.randint(k_ad, (B,), 0, 3, dtype=jnp.int32)
    ecfp = jax.random.bernoulli(k_fp, 0.1, (B, ecfp_len)).astype(jnp.float32)

    out = aggre_forward(smiles_emb, m_z, adduct, ecfp, params)
    out = jax.block_until_ready(out)

    ref = aggre_reference(smiles_emb, m_z, adduct, ecfp, params)
    assert out.shape == (B, S, D)
    # bf16 MXU operands with f32 accumulation -> small quantization error vs f32 ref
    assert bool(jnp.allclose(out, ref, atol=2e-2, rtol=2e-2)), "mismatch vs reference"

    print("KERNEL_OK")
</pallas_src>

<mosaic_0001>
module attributes {stable_mosaic.version = 11 : i64} {
  func.func @_aggre_kernel(%arg0: i32, %arg1: memref<16x32xbf16, #tpu.memory_space<vmem>>, %arg2: memref<2x1024xbf16, #tpu.memory_space<vmem>>, %arg3: memref<2x1xf32, #tpu.memory_space<vmem>>, %arg4: memref<2x2xf32, #tpu.memory_space<vmem>>, %arg5: memref<1024x32xbf16, #tpu.memory_space<vmem>>, %arg6: memref<32x64xbf16, #tpu.memory_space<vmem>>, %arg7: memref<32x64xbf16, #tpu.memory_space<vmem>>, %arg8: memref<1x64xf32, #tpu.memory_space<vmem>>, %arg9: memref<2x64xf32, #tpu.memory_space<vmem>>, %arg10: memref<1x64xf32, #tpu.memory_space<vmem>>, %arg11: memref<64x32xbf16, #tpu.memory_space<vmem>>, %arg12: memref<1x32xf32, #tpu.memory_space<vmem>>, %arg13: memref<16x32xf32, #tpu.memory_space<vmem>>) attributes {dimension_semantics = [#tpu.dimension_semantics<parallel>], iteration_bounds = array<i64: 1>, scalar_prefetch = 0 : i64, scratch_operands = 0 : i64, tpu.core_type = #tpu.core_type<tc>, window_params = [{transform_indices = @transform_0, window_bounds = array<i64: 16, 32>}, {transform_indices = @transform_1, window_bounds = array<i64: 2, 1024>}, {transform_indices = @transform_2, window_bounds = array<i64: 2, 1>}, {transform_indices = @transform_3, window_bounds = array<i64: 2, 2>}, {pipeline_mode = #tpu.pipeline_mode<synchronous>, transform_indices = @transform_4, window_bounds = array<i64: 1024, 32>}, {pipeline_mode = #tpu.pipeline_mode<synchronous>, transform_indices = @transform_5, window_bounds = array<i64: 32, 64>}, {pipeline_mode = #tpu.pipeline_mode<synchronous>, transform_indices = @transform_6, window_bounds = array<i64: 32, 64>}, {pipeline_mode = #tpu.pipeline_mode<synchronous>, transform_indices = @transform_7, window_bounds = array<i64: 1, 64>}, {pipeline_mode = #tpu.pipeline_mode<synchronous>, transform_indices = @transform_8, window_bounds = array<i64: 2, 64>}, {pipeline_mode = #tpu.pipeline_mode<synchronous>, transform_indices = @transform_9, window_bounds = array<i64: 1, 64>}, {pipeline_mode = #tpu.pipeline_mode<synchronous>, transform_indices = @transform_10, window_bounds = array<i64: 64, 32>}, {pipeline_mode = #tpu.pipeline_mode<synchronous>, transform_indices = @transform_11, window_bounds = array<i64: 1, 32>}, {transform_indices = @transform_12, window_bounds = array<i64: 16, 32>}]} {
    %c0 = arith.constant 0 : index
    %c0_0 = arith.constant 0 : index
    %0 = vector.load %arg3[%c0, %c0_0] : memref<2x1xf32, #tpu.memory_space<vmem>>, vector<2x1xf32>
    %c0_1 = arith.constant 0 : index
    %c0_2 = arith.constant 0 : index
    %1 = vector.load %arg8[%c0_1, %c0_2] : memref<1x64xf32, #tpu.memory_space<vmem>>, vector<1x64xf32>
    %2 = vector.broadcast %0 : vector<2x1xf32> to vector<2x64xf32>
    %3 = vector.broadcast %1 : vector<1x64xf32> to vector<2x64xf32>
    %4 = arith.mulf %2, %3 : vector<2x64xf32>
    %c0_3 = arith.constant 0 : index
    %c0_4 = arith.constant 0 : index
    %5 = vector.load %arg10[%c0_3, %c0_4] : memref<1x64xf32, #tpu.memory_space<vmem>>, vector<1x64xf32>
    %6 = vector.broadcast %5 : vector<1x64xf32> to vector<2x64xf32>
    %7 = arith.addf %4, %6 : vector<2x64xf32>
    %c0_5 = arith.constant 0 : index
    %c0_6 = arith.constant 0 : index
    %8 = vector.load %arg4[%c0_5, %c0_6] : memref<2x2xf32, #tpu.memory_space<vmem>>, vector<2x2xf32>
    %9 = vector.extract_strided_slice %8 {offsets = [0, 0], sizes = [2, 1], strides = [1, 1]} : vector<2x2xf32> to vector<2x1xf32>
    %c0_7 = arith.constant 0 : index
    %c0_8 = arith.constant 0 : index
    %10 = vector.load %arg9[%c0_7, %c0_8] : memref<2x64xf32, #tpu.memory_space<vmem>>, vector<1x64xf32>
    %11 = vector.broadcast %9 : vector<2x1xf32> to vector<2x64xf32>
    %12 = vector.broadcast %10 : vector<1x64xf32> to vector<2x64xf32>
    %13 = arith.mulf %11, %12 : vector<2x64xf32>
    %14 = arith.addf %7, %13 : vector<2x64xf32>
    %15 = vector.extract_strided_slice %8 {offsets = [0, 1], sizes = [2, 1], strides = [1, 1]} : vector<2x2xf32> to vector<2x1xf32>
    %c1 = arith.constant 1 : index
    %c0_9 = arith.constant 0 : index
    %16 = vector.load %arg9[%c1, %c0_9] : memref<2x64xf32, #tpu.memory_space<vmem>>, vector<1x64xf32>
    %17 = vector.broadcast %15 : vector<2x1xf32> to vector<2x64xf32>
    %18 = vector.broadcast %16 : vector<1x64xf32> to vector<2x64xf32>
    %19 = arith.mulf %17, %18 : vector<2x64xf32>
    %20 = arith.addf %14, %19 : vector<2x64xf32>
    %c0_10 = arith.constant 0 : index
    %c0_11 = arith.constant 0 : index
    %21 = vector.load %arg2[%c0_10, %c0_11] : memref<2x1024xbf16, #tpu.memory_space<vmem>>, vector<2x1024xbf16>
    %c0_12 = arith.constant 0 : index
    %c0_13 = arith.constant 0 : index
    %22 = vector.load %arg5[%c0_12, %c0_13] : memref<1024x32xbf16, #tpu.memory_space<vmem>>, vector<1024x32xbf16>
    %cst = arith.constant dense<0.000000e+00> : vector<2x32xf32>
    %23 = tpu.matmul %21, %22, %cst {dimension_numbers = #tpu.dot_dimension_numbers<[1], [0], [0], [1], [0, 0, 1, 1], [], []>} : vector<2x1024xbf16>, vector<1024x32xbf16>, vector<2x32xf32> -> vector<2x32xf32>
    %24 = arith.truncf %23 : vector<2x32xf32> to vector<2x32xbf16>
    %c0_14 = arith.constant 0 : index
    %c0_15 = arith.constant 0 : index
    %25 = vector.load %arg6[%c0_14, %c0_15] : memref<32x64xbf16, #tpu.memory_space<vmem>>, vector<32x64xbf16>
    %cst_16 = arith.constant dense<0.000000e+00> : vector<2x64xf32>
    %26 = tpu.matmul %24, %25, %cst_16 {dimension_numbers = #tpu.dot_dimension_numbers<[1], [0], [0], [1], [0, 0, 1, 1], [], []>} : vector<2x32xbf16>, vector<32x64xbf16>, vector<2x64xf32> -> vector<2x64xf32>
    %27 = arith.addf %20, %26 : vector<2x64xf32>
    %c0_17 = arith.constant 0 : index
    %c0_18 = arith.constant 0 : index
    %28 = vector.load %arg1[%c0_17, %c0_18] : memref<16x32xbf16, #tpu.memory_space<vmem>>, vector<16x32xbf16>
    %c0_19 = arith.constant 0 : index
    %c0_20 = arith.constant 0 : index
    %29 = vector.load %arg7[%c0_19, %c0_20] : memref<32x64xbf16, #tpu.memory_space<vmem>>, vector<32x64xbf16>
    %cst_21 = arith.constant dense<0.000000e+00> : vector<16x64xf32>
    %30 = tpu.matmul %28, %29, %cst_21 {dimension_numbers = #tpu.dot_dimension_numbers<[1], [0], [0], [1], [0, 0, 1, 1], [], []>} : vector<16x32xbf16>, vector<32x64xbf16>, vector<16x64xf32> -> vector<16x64xf32>
    %31 = vector.shape_cast %30 : vector<16x64xf32> to vector<2x8x64xf32>
    %32 = vector.shape_cast %27 : vector<2x64xf32> to vector<2x1x64xf32>
    %33 = vector.broadcast %32 : vector<2x1x64xf32> to vector<2x8x64xf32>
    %34 = arith.addf %31, %33 : vector<2x8x64xf32>
    %cst_22 = arith.constant 5.000000e-01 : f32
    %35 = vector.broadcast %cst_22 : f32 to vector<2x8x64xf32>
    %36 = arith.mulf %35, %34 : vector<2x8x64xf32>
    %cst_23 = arith.constant 0.707106769 : f32
    %37 = vector.broadcast %cst_23 : f32 to vector<2x8x64xf32>
    %38 = arith.mulf %34, %37 : vector<2x8x64xf32>
    %39 = math.erf %38 : vector<2x8x64xf32>
    %cst_24 = arith.constant 1.000000e+00 : f32
    %40 = vector.broadcast %cst_24 : f32 to vector<2x8x64xf32>
    %41 = arith.addf %40, %39 : vector<2x8x64xf32>
    %42 = arith.mulf %36, %41 : vector<2x8x64xf32>
    %43 = vector.shape_cast %42 : vector<2x8x64xf32> to vector<16x64xf32>
    %44 = arith.truncf %43 : vector<16x64xf32> to vector<16x64xbf16>
    %c0_25 = arith.constant 0 : index
    %c0_26 = arith.constant 0 : index
    %45 = vector.load %arg11[%c0_25, %c0_26] : memref<64x32xbf16, #tpu.memory_space<vmem>>, vector<64x32xbf16>
    %cst_27 = arith.constant dense<0.000000e+00> : vector<16x32xf32>
    %46 = tpu.matmul %44, %45, %cst_27 {dimension_numbers = #tpu.dot_dimension_numbers<[1], [0], [0], [1], [0, 0, 1, 1], [], []>} : vector<16x64xbf16>, vector<64x32xbf16>, vector<16x32xf32> -> vector<16x32xf32>
    %c0_28 = arith.constant 0 : index
    %c0_29 = arith.constant 0 : index
    %47 = vector.load %arg12[%c0_28, %c0_29] : memref<1x32xf32, #tpu.memory_space<vmem>>, vector<1x32xf32>
    %48 = vector.broadcast %47 : vector<1x32xf32> to vector<16x32xf32>
    %49 = arith.addf %46, %48 : vector<16x32xf32>
    %cst_30 = arith.constant 5.000000e-01 : f32
    %50 = vector.broadcast %cst_30 : f32 to vector<16x32xf32>
    %51 = arith.mulf %50, %49 : vector<16x32xf32>
    %cst_31 = arith.constant 0.707106769 : f32
    %52 = vector.broadcast %cst_31 : f32 to vector<16x32xf32>
    %53 = arith.mulf %49, %52 : vector<16x32xf32>
    %54 = math.erf %53 : vector<16x32xf32>
    %cst_32 = arith.constant 1.000000e+00 : f32
    %55 = vector.broadcast %cst_32 : f32 to vector<16x32xf32>
    %56 = arith.addf %55, %54 : vector<16x32xf32>
    %57 = arith.mulf %51, %56 : vector<16x32xf32>
    %c0_33 = arith.constant 0 : index
    %c0_34 = arith.constant 0 : index
    %58 = vector.load %arg13[%c0_33, %c0_34] : memref<16x32xf32, #tpu.memory_space<vmem>>, vector<16x32xf32>
    tpu.vector_store %arg13[%c0_33, %c0_34], %57 {strides = array<i32>} : memref<16x32xf32, #tpu.memory_space<vmem>>, vector<16x32xf32>,
    return
  }
  func.func @transform_0(%arg0: i32) -> (i32, i32) {
    %c0_i32 = arith.constant 0 : i32
    %c0_i32_0 = arith.constant 0 : i32
    return %arg0, %c0_i32 : i32, i32
  }
  func.func @transform_1(%arg0: i32) -> (i32, i32) {
    %c0_i32 = arith.constant 0 : i32
    %c0_i32_0 = arith.constant 0 : i32
    return %arg0, %c0_i32 : i32, i32
  }
  func.func @transform_2(%arg0: i32) -> (i32, i32) {
    %c0_i32 = arith.constant 0 : i32
    %c0_i32_0 = arith.constant 0 : i32
    return %arg0, %c0_i32 : i32, i32
  }
  func.func @transform_3(%arg0: i32) -> (i32, i32) {
    %c0_i32 = arith.constant 0 : i32
    %c0_i32_0 = arith.constant 0 : i32
    return %arg0, %c0_i32 : i32, i32
  }
  func.func @transform_4(%arg0: i32) -> (i32, i32) {
    %c0_i32 = arith.constant 0 : i32
    %c0_i32_0 = arith.constant 0 : i32
    %c0_i32_1 = arith.constant 0 : i32
    return %c0_i32, %c0_i32_0 : i32, i32
  }
  func.func @transform_5(%arg0: i32) -> (i32, i32) {
    %c0_i32 = arith.constant 0 : i32
    %c0_i32_0 = arith.constant 0 : i32
    %c0_i32_1 = arith.constant 0 : i32
    return %c0_i32, %c0_i32_0 : i32, i32
  }
  func.func @transform_6(%arg0: i32) -> (i32, i32) {
    %c0_i32 = arith.constant 0 : i32
    %c0_i32_0 = arith.constant 0 : i32
    %c0_i32_1 = arith.constant 0 : i32
    return %c0_i32, %c0_i32_0 : i32, i32
  }
  func.func @transform_7(%arg0: i32) -> (i32, i32) {
    %c0_i32 = arith.constant 0 : i32
    %c0_i32_0 = arith.constant 0 : i32
    %c0_i32_1 = arith.constant 0 : i32
    return %c0_i32, %c0_i32_0 : i32, i32
  }
  func.func @transform_8(%arg0: i32) -> (i32, i32) {
    %c0_i32 = arith.constant 0 : i32
    %c0_i32_0 = arith.constant 0 : i32
    %c0_i32_1 = arith.constant 0 : i32
    return %c0_i32, %c0_i32_0 : i32, i32
  }
  func.func @transform_9(%arg0: i32) -> (i32, i32) {
    %c0_i32 = arith.constant 0 : i32
    %c0_i32_0 = arith.constant 0 : i32
    %c0_i32_1 = arith.constant 0 : i32
    return %c0_i32, %c0_i32_0 : i32, i32
  }
  func.func @transform_10(%arg0: i32) -> (i32, i32) {
    %c0_i32 = arith.constant 0 : i32
    %c0_i32_0 = arith.constant 0 : i32
    %c0_i32_1 = arith.constant 0 : i32
    return %c0_i32, %c0_i32_0 : i32, i32
  }
  func.func @transform_11(%arg0: i32) -> (i32, i32) {
    %c0_i32 = arith.constant 0 : i32
    %c0_i32_0 = arith.constant 0 : i32
    %c0_i32_1 = arith.constant 0 : i32
    return %c0_i32, %c0_i32_0 : i32, i32
  }
  func.func @transform_12(%arg0: i32) -> (i32, i32) {
    %c0_i32 = arith.constant 0 : i32
    %c0_i32_0 = arith.constant 0 : i32
    return %arg0, %c0_i32 : i32, i32
  }
}

module attributes {stable_mosaic.version = 11 : i64} {
  func.func @_aggre_kernel(%arg0: i32, %arg1: memref<16x32xbf16, #tpu.memory_space<vmem>>, %arg2: memref<2x1024xbf16, #tpu.memory_space<vmem>>, %arg3: memref<2x1xf32, #tpu.memory_space<vmem>>, %arg4: memref<2x2xf32, #tpu.memory_space<vmem>>, %arg5: memref<1024x32xbf16, #tpu.memory_space<vmem>>, %arg6: memref<32x64xbf16, #tpu.memory_space<vmem>>, %arg7: memref<32x64xbf16, #tpu.memory_space<vmem>>, %arg8: memref<1x64xf32, #tpu.memory_space<vmem>>, %arg9: memref<2x64xf32, #tpu.memory_space<vmem>>, %arg10: memref<1x64xf32, #tpu.memory_space<vmem>>, %arg11: memref<64x32xbf16, #tpu.memory_space<vmem>>, %arg12: memref<1x32xf32, #tpu.memory_space<vmem>>, %arg13: memref<16x32xf32, #tpu.memory_space<vmem>>) attributes {dimension_semantics = [#tpu.dimension_semantics<parallel>], iteration_bounds = array<i64: 1>, scalar_prefetch = 0 : i64, scratch_operands = 0 : i64, tpu.core_type = #tpu.core_type<tc>, window_params = [{transform_indices = @transform_0, window_bounds = array<i64: 16, 32>}, {transform_indices = @transform_1, window_bounds = array<i64: 2, 1024>}, {transform_indices = @transform_2, window_bounds = array<i64: 2, 1>}, {transform_indices = @transform_3, window_bounds = array<i64: 2, 2>}, {pipeline_mode = #tpu.pipeline_mode<synchronous>, transform_indices = @transform_4, window_bounds = array<i64: 1024, 32>}, {pipeline_mode = #tpu.pipeline_mode<synchronous>, transform_indices = @transform_5, window_bounds = array<i64: 32, 64>}, {pipeline_mode = #tpu.pipeline_mode<synchronous>, transform_indices = @transform_6, window_bounds = array<i64: 32, 64>}, {pipeline_mode = #tpu.pipeline_mode<synchronous>, transform_indices = @transform_7, window_bounds = array<i64: 1, 64>}, {pipeline_mode = #tpu.pipeline_mode<synchronous>, transform_indices = @transform_8, window_bounds = array<i64: 2, 64>}, {pipeline_mode = #tpu.pipeline_mode<synchronous>, transform_indices = @transform_9, window_bounds = array<i64: 1, 64>}, {pipeline_mode = #tpu.pipeline_mode<synchronous>, transform_indices = @transform_10, window_bounds = array<i64: 64, 32>}, {pipeline_mode = #tpu.pipeline_mode<synchronous>, transform_indices = @transform_11, window_bounds = array<i64: 1, 32>}, {transform_indices = @transform_12, window_bounds = array<i64: 16, 32>}]} {
    %c0 = arith.constant 0 : index
    %c0_0 = arith.constant 0 : index
    %0 = vector.load %arg3[%c0, %c0_0] : memref<2x1xf32, #tpu.memory_space<vmem>>, vector<2x1xf32>
    %c0_1 = arith.constant 0 : index
    %c0_2 = arith.constant 0 : index
    %1 = vector.load %arg8[%c0_1, %c0_2] : memref<1x64xf32, #tpu.memory_space<vmem>>, vector<1x64xf32>
    %2 = vector.broadcast %0 : vector<2x1xf32> to vector<2x64xf32>
    %3 = vector.broadcast %1 : vector<1x64xf32> to vector<2x64xf32>
    %4 = arith.mulf %2, %3 : vector<2x64xf32>
    %c0_3 = arith.constant 0 : index
    %c0_4 = arith.constant 0 : index
    %5 = vector.load %arg10[%c0_3, %c0_4] : memref<1x64xf32, #tpu.memory_space<vmem>>, vector<1x64xf32>
    %6 = vector.broadcast %5 : vector<1x64xf32> to vector<2x64xf32>
    %7 = arith.addf %4, %6 : vector<2x64xf32>
    %c0_5 = arith.constant 0 : index
    %c0_6 = arith.constant 0 : index
    %8 = vector.load %arg4[%c0_5, %c0_6] : memref<2x2xf32, #tpu.memory_space<vmem>>, vector<2x2xf32>
    %9 = vector.extract_strided_slice %8 {offsets = [0, 0], sizes = [2, 1], strides = [1, 1]} : vector<2x2xf32> to vector<2x1xf32>
    %c0_7 = arith.constant 0 : index
    %c0_8 = arith.constant 0 : index
    %10 = vector.load %arg9[%c0_7, %c0_8] : memref<2x64xf32, #tpu.memory_space<vmem>>, vector<1x64xf32>
    %11 = vector.broadcast %9 : vector<2x1xf32> to vector<2x64xf32>
    %12 = vector.broadcast %10 : vector<1x64xf32> to vector<2x64xf32>
    %13 = arith.mulf %11, %12 : vector<2x64xf32>
    %14 = arith.addf %7, %13 : vector<2x64xf32>
    %15 = vector.extract_strided_slice %8 {offsets = [0, 1], sizes = [2, 1], strides = [1, 1]} : vector<2x2xf32> to vector<2x1xf32>
    %c1 = arith.constant 1 : index
    %c0_9 = arith.constant 0 : index
    %16 = vector.load %arg9[%c1, %c0_9] : memref<2x64xf32, #tpu.memory_space<vmem>>, vector<1x64xf32>
    %17 = vector.broadcast %15 : vector<2x1xf32> to vector<2x64xf32>
    %18 = vector.broadcast %16 : vector<1x64xf32> to vector<2x64xf32>
    %19 = arith.mulf %17, %18 : vector<2x64xf32>
    %20 = arith.addf %14, %19 : vector<2x64xf32>
    %c0_10 = arith.constant 0 : index
    %c0_11 = arith.constant 0 : index
    %21 = vector.load %arg2[%c0_10, %c0_11] : memref<2x1024xbf16, #tpu.memory_space<vmem>>, vector<2x1024xbf16>
    %c0_12 = arith.constant 0 : index
    %c0_13 = arith.constant 0 : index
    %22 = vector.load %arg5[%c0_12, %c0_13] : memref<1024x32xbf16, #tpu.memory_space<vmem>>, vector<1024x32xbf16>
    %cst = arith.constant dense<0.000000e+00> : vector<2x32xf32>
    %23 = tpu.matmul %21, %22, %cst {dimension_numbers = #tpu.dot_dimension_numbers<[1], [0], [0], [1], [0, 0, 1, 1], [], []>} : vector<2x1024xbf16>, vector<1024x32xbf16>, vector<2x32xf32> -> vector<2x32xf32>
    %24 = arith.truncf %23 : vector<2x32xf32> to vector<2x32xbf16>
    %c0_14 = arith.constant 0 : index
    %c0_15 = arith.constant 0 : index
    %25 = vector.load %arg6[%c0_14, %c0_15] : memref<32x64xbf16, #tpu.memory_space<vmem>>, vector<32x64xbf16>
    %cst_16 = arith.constant dense<0.000000e+00> : vector<2x64xf32>
    %26 = tpu.matmul %24, %25, %cst_16 {dimension_numbers = #tpu.dot_dimension_numbers<[1], [0], [0], [1], [0, 0, 1, 1], [], []>} : vector<2x32xbf16>, vector<32x64xbf16>, vector<2x64xf32> -> vector<2x64xf32>
    %27 = arith.addf %20, %26 : vector<2x64xf32>
    %c0_17 = arith.constant 0 : index
    %c0_18 = arith.constant 0 : index
    %28 = vector.load %arg1[%c0_17, %c0_18] : memref<16x32xbf16, #tpu.memory_space<vmem>>, vector<16x32xbf16>
    %c0_19 = arith.constant 0 : index
    %c0_20 = arith.constant 0 : index
    %29 = vector.load %arg7[%c0_19, %c0_20] : memref<32x64xbf16, #tpu.memory_space<vmem>>, vector<32x64xbf16>
    %cst_21 = arith.constant dense<0.000000e+00> : vector<16x64xf32>
    %30 = tpu.matmul %28, %29, %cst_21 {dimension_numbers = #tpu.dot_dimension_numbers<[1], [0], [0], [1], [0, 0, 1, 1], [], []>} : vector<16x32xbf16>, vector<32x64xbf16>, vector<16x64xf32> -> vector<16x64xf32>
    %31 = vector.shape_cast %30 : vector<16x64xf32> to vector<2x8x64xf32>
    %32 = vector.shape_cast %27 : vector<2x64xf32> to vector<2x1x64xf32>
    %33 = vector.broadcast %32 : vector<2x1x64xf32> to vector<2x8x64xf32>
    %34 = arith.addf %31, %33 : vector<2x8x64xf32>
    %cst_22 = arith.constant 5.000000e-01 : f32
    %35 = vector.broadcast %cst_22 : f32 to vector<2x8x64xf32>
    %36 = arith.mulf %35, %34 : vector<2x8x64xf32>
    %cst_23 = arith.constant 0.707106769 : f32
    %37 = vector.broadcast %cst_23 : f32 to vector<2x8x64xf32>
    %38 = arith.mulf %34, %37 : vector<2x8x64xf32>
    %39 = math.erf %38 : vector<2x8x64xf32>
    %cst_24 = arith.constant 1.000000e+00 : f32
    %40 = vector.broadcast %cst_24 : f32 to vector<2x8x64xf32>
    %41 = arith.addf %40, %39 : vector<2x8x64xf32>
    %42 = arith.mulf %36, %41 : vector<2x8x64xf32>
    %43 = vector.shape_cast %42 : vector<2x8x64xf32> to vector<16x64xf32>
    %44 = arith.truncf %43 : vector<16x64xf32> to vector<16x64xbf16>
    %c0_25 = arith.constant 0 : index
    %c0_26 = arith.constant 0 : index
    %45 = vector.load %arg11[%c0_25, %c0_26] : memref<64x32xbf16, #tpu.memory_space<vmem>>, vector<64x32xbf16>
    %cst_27 = arith.constant dense<0.000000e+00> : vector<16x32xf32>
    %46 = tpu.matmul %44, %45, %cst_27 {dimension_numbers = #tpu.dot_dimension_numbers<[1], [0], [0], [1], [0, 0, 1, 1], [], []>} : vector<16x64xbf16>, vector<64x32xbf16>, vector<16x32xf32> -> vector<16x32xf32>
    %c0_28 = arith.constant 0 : index
    %c0_29 = arith.constant 0 : index
    %47 = vector.load %arg12[%c0_28, %c0_29] : memref<1x32xf32, #tpu.memory_space<vmem>>, vector<1x32xf32>
    %48 = vector.broadcast %47 : vector<1x32xf32> to vector<16x32xf32>
    %49 = arith.addf %46, %48 : vector<16x32xf32>
    %cst_30 = arith.constant 5.000000e-01 : f32
    %50 = vector.broadcast %cst_30 : f32 to vector<16x32xf32>
    %51 = arith.mulf %50, %49 : vector<16x32xf32>
    %cst_31 = arith.constant 0.707106769 : f32
    %52 = vector.broadcast %cst_31 : f32 to vector<16x32xf32>
    %53 = arith.mulf %49, %52 : vector<16x32xf32>
    %54 = math.erf %53 : vector<16x32xf32>
    %cst_32 = arith.constant 1.000000e+00 : f32
    %55 = vector.broadcast %cst_32 : f32 to vector<16x32xf32>
    %56 = arith.addf %55, %54 : vector<16x32xf32>
    %57 = arith.mulf %51, %56 : vector<16x32xf32>
    %c0_33 = arith.constant 0 : index
    %c0_34 = arith.constant 0 : index
    %58 = vector.load %arg13[%c0_33, %c0_34] : memref<16x32xf32, #tpu.memory_space<vmem>>, vector<16x32xf32>
    tpu.vector_store %arg13[%c0_33, %c0_34], %57 {strides = array<i32>} : memref<16x32xf32, #tpu.memory_space<vmem>>, vector<16x32xf32>,
    return
  }
  func.func @transform_0(%arg0: i32) -> (i32, i32) {
    %c0_i32 = arith.constant 0 : i32
    %c0_i32_0 = arith.constant 0 : i32
    return %arg0, %c0_i32 : i32, i32
  }
  func.func @transform_1(%arg0: i32) -> (i32, i32) {
    %c0_i32 = arith.constant 0 : i32
    %c0_i32_0 = arith.constant 0 : i32
    return %arg0, %c0_i32 : i32, i32
  }
  func.func @transform_2(%arg0: i32) -> (i32, i32) {
    %c0_i32 = arith.constant 0 : i32
    %c0_i32_0 = arith.constant 0 : i32
    return %arg0, %c0_i32 : i32, i32
  }
  func.func @transform_3(%arg0: i32) -> (i32, i32) {
    %c0_i32 = arith.constant 0 : i32
    %c0_i32_0 = arith.constant 0 : i32
    return %arg0, %c0_i32 : i32, i32
  }
  func.func @transform_4(%arg0: i32) -> (i32, i32) {
    %c0_i32 = arith.constant 0 : i32
    %c0_i32_0 = arith.constant 0 : i32
    %c0_i32_1 = arith.constant 0 : i32
    return %c0_i32, %c0_i32_0 : i32, i32
  }
  func.func @transform_5(%arg0: i32) -> (i32, i32) {
    %c0_i32 = arith.constant 0 : i32
    %c0_i32_0 = arith.constant 0 : i32
    %c0_i32_1 = arith.constant 0 : i32
    return %c0_i32, %c0_i32_0 : i32, i32
  }
  func.func @transform_6(%arg0: i32) -> (i32, i32) {
    %c0_i32 = arith.constant 0 : i32
    %c0_i32_0 = arith.constant 0 : i32
    %c0_i32_1 = arith.constant 0 : i32
    return %c0_i32, %c0_i32_0 : i32, i32
  }
  func.func @transform_7(%arg0: i32) -> (i32, i32) {
    %c0_i32 = arith.constant 0 : i32
    %c0_i32_0 = arith.constant 0 : i32
    %c0_i32_1 = arith.constant 0 : i32
    return %c0_i32, %c0_i32_0 : i32, i32
  }
  func.func @transform_8(%arg0: i32) -> (i32, i32) {
    %c0_i32 = arith.constant 0 : i32
    %c0_i32_0 = arith.constant 0 : i32
    %c0_i32_1 = arith.constant 0 : i32
    return %c0_i32, %c0_i32_0 : i32, i32
  }
  func.func @transform_9(%arg0: i32) -> (i32, i32) {
    %c0_i32 = arith.constant 0 : i32
    %c0_i32_0 = arith.constant 0 : i32
    %c0_i32_1 = arith.constant 0 : i32
    return %c0_i32, %c0_i32_0 : i32, i32
  }
  func.func @transform_10(%arg0: i32) -> (i32, i32) {
    %c0_i32 = arith.constant 0 : i32
    %c0_i32_0 = arith.constant 0 : i32
    %c0_i32_1 = arith.constant 0 : i32
    return %c0_i32, %c0_i32_0 : i32, i32
  }
  func.func @transform_11(%arg0: i32) -> (i32, i32) {
    %c0_i32 = arith.constant 0 : i32
    %c0_i32_0 = arith.constant 0 : i32
    %c0_i32_1 = arith.constant 0 : i32
    return %c0_i32, %c0_i32_0 : i32, i32
  }
  func.func @transform_12(%arg0: i32) -> (i32, i32) {
    %c0_i32 = arith.constant 0 : i32
    %c0_i32_0 = arith.constant 0 : i32
    return %arg0, %c0_i32 : i32, i32
  }
}

</mosaic_0001>

<bundles_post_ra>
// kernel: tpu_custom_call.1
= control target key start
LH: loop header
LB: loop body
LE: loop exit
PB: predicated region body
PF: predicated region fallthrough
CT: control target
= control target key end

     0   :  { %s1816_s0 = inlined_call_operand.vmem [shape: bf16[16,32], index: 0, kind: input, shape index: {}]   ;;  %s1817_s1 = inlined_call_operand.vmem [shape: bf16[2,1024], index: 1, kind: input, shape index: {}]   ;;  %s1818_s2 = inlined_call_operand.vmem [shape: f32[2,1], index: 2, kind: input, shape index: {}]   ;;  %s1819_s3 = inlined_call_operand.vmem [shape: f32[2,2], index: 3, kind: input, shape index: {}]   ;;  %s1820_s4 = inlined_call_operand.vmem [shape: bf16[1024,32], index: 4, kind: input, shape index: {}]   ;;  %s1821_s5 = inlined_call_operand.vmem [shape: bf16[32,64], index: 5, kind: input, shape index: {}]   ;;  %s1822_s6 = inlined_call_operand.vmem [shape: bf16[32,64], index: 6, kind: input, shape index: {}]   ;;  %s1823_s7 = inlined_call_operand.vmem [shape: f32[1,64], index: 7, kind: input, shape index: {}]   ;;  %s1824_s8 = inlined_call_operand.vmem [shape: f32[2,64], index: 8, kind: input, shape index: {}]   ;;  %s1825_s9 = inlined_call_operand.vmem [shape: f32[1,64], index: 9, kind: input, shape index: {}]   ;;  %s1826_s10 = inlined_call_operand.vmem [shape: bf16[64,32], index: 10, kind: input, shape index: {}]   ;;  %s1827_s11 = inlined_call_operand.vmem [shape: f32[1,32], index: 11, kind: input, shape index: {}]   ;;  %s1828_s12 = inlined_call_operand.hbm [shape: f32[16,32], index: 12, kind: output, shape index: {}]  }
   0x1   :  { %v1352_v0 = vld [vmem:[%s1820_s4 + $0x38] sm:$0xff]  ;;  %v1351_v4 = vld [vmem:[%s1820_s4 + $0x30] sm:$0xff]  ;;  %v1350_v8 = vld [vmem:[%s1820_s4 + $0x28] sm:$0xff] }
   0x2   :  { %v1360_v1 = vld [vmem:[%s1820_s4 + $0x78] sm:$0xff]  ;;  %608 = vmatpush.bf16.msra.mxu0 %v1352_v0  ;;  %v1359_v5 = vld [vmem:[%s1820_s4 + $0x70] sm:$0xff]  ;;  %v1358_v9 = vld [vmem:[%s1820_s4 + $0x68] sm:$0xff] }
   0x3   :  { %v1368_v2 = vld [vmem:[%s1820_s4 + $0xb8] sm:$0xff]  ;;  %621 = vmatpush.bf16.msra.mxu1 %v1360_v1  ;;  %v1367_v6 = vld [vmem:[%s1820_s4 + $0xb0] sm:$0xff]  ;;  %v1366_v10 = vld [vmem:[%s1820_s4 + $0xa8] sm:$0xff] }
   0x4   :  { %v1376_v3 = vld [vmem:[%s1820_s4 + $0xf8] sm:$0xff]  ;;  %634 = vmatpush.bf16.msra.mxu2 %v1368_v2  ;;  %v1375_v7 = vld [vmem:[%s1820_s4 + $0xf0] sm:$0xff]  ;;  %v1374_v11 = vld [vmem:[%s1820_s4 + $0xe8] sm:$0xff] }
   0x5   :  { %647 = vmatpush.bf16.msra.mxu3 %v1376_v3  ;;  %v1349_v12 = vld [vmem:[%s1820_s4 + $0x20] sm:$0xff]  ;;  %v1348_v17 = vld [vmem:[%s1820_s4 + $0x18] sm:$0xff]  ;;  %v1347_v21 = vld [vmem:[%s1820_s4 + $0x10] sm:$0xff] }
   0x6   :  { %609 = vmatpush.bf16.msra.mxu0 %v1351_v4  ;;  %v1357_v13 = vld [vmem:[%s1820_s4 + $0x60] sm:$0xff]  ;;  %v1356_v18 = vld [vmem:[%s1820_s4 + $0x58] sm:$0xff]  ;;  %v1355_v22 = vld [vmem:[%s1820_s4 + $0x50] sm:$0xff] }
   0x7   :  { %622 = vmatpush.bf16.msra.mxu1 %v1359_v5  ;;  %v1365_v14 = vld [vmem:[%s1820_s4 + $0xa0] sm:$0xff]  ;;  %v1364_v19 = vld [vmem:[%s1820_s4 + $0x98] sm:$0xff]  ;;  %v1363_v23 = vld [vmem:[%s1820_s4 + $0x90] sm:$0xff] }
   0x8   :  { %635 = vmatpush.bf16.msra.mxu2 %v1367_v6  ;;  %v1373_v15 = vld [vmem:[%s1820_s4 + $0xe0] sm:$0xff]  ;;  %v1372_v20 = vld [vmem:[%s1820_s4 + $0xd8] sm:$0xff]  ;;  %v1371_v24 = vld [vmem:[%s1820_s4 + $0xd0] sm:$0xff] }
   0x9   :  { %648 = vmatpush.bf16.msra.mxu3 %v1375_v7  ;;  %v77_v16 = vld [vmem:[%s1817_s1] sm:$0xff] }
   0xa   :  { %610 = vmatpush.bf16.msra.mxu0 %v1350_v8  ;;  %207 = vst [vmem:[#allocation1] ss:$9 sm:$0xff] %v77_v16 }
   0xb   :  { %623 = vmatpush.bf16.msra.mxu1 %v1358_v9 }
   0xc   :  { %636 = vmatpush.bf16.msra.mxu2 %v1366_v10 }
   0xd   :  { %649 = vmatpush.bf16.msra.mxu3 %v1374_v11 }
   0xe   :  { %611 = vmatpush.bf16.msra.mxu0 %v1349_v12 }
   0xf   :  { %624 = vmatpush.bf16.msra.mxu1 %v1357_v13 }
  0x10   :  { %637 = vmatpush.bf16.msra.mxu2 %v1365_v14 }
  0x11   :  { %650 = vmatpush.bf16.msra.mxu3 %v1373_v15 }
  0x12   :  { %612 = vmatpush.bf16.msra.mxu0 %v1348_v17 }
  0x13   :  { %625 = vmatpush.bf16.msra.mxu1 %v1356_v18 }
  0x14   :  { %638 = vmatpush.bf16.msra.mxu2 %v1364_v19 }
  0x15   :  { %651 = vmatpush.bf16.msra.mxu3 %v1372_v20 }
  0x16   :  { %17 = vsyncpa [#allocation3], 0  ;;  %613 = vmatpush.bf16.msra.mxu0 %v1347_v21  ;;  %v1346_v25 = vld [vmem:[%s1820_s4 + $0x8] sm:$0xff]  ;;  %v1345_v29 = vld [vmem:[%s1820_s4] sm:$0xff]  ;;  %v1465_v12 = vmov 0   ;;  %vm729_vm0 = vcmask 261120  }
  0x17   :  { %626 = vmatpush.bf16.msra.mxu1 %v1355_v22  ;;  %v1354_v26 = vld [vmem:[%s1820_s4 + $0x48] sm:$0xff]  ;;  %v1353_v30 = vld [vmem:[%s1820_s4 + $0x40] sm:$0xff]  ;;  %v1384_v33 = vld [vmem:[%s1820_s4 + $0x138] sm:$0xff]  ;;  %1423 = vset.pattern.permute.xlu0 %v1465_v12  ;;  %vm920_vm9 = vcmask 523264   ;;  %s1034_s25 = sshll.u32 %s1828_s12, 4  ;;  %s1468_s26 = smov 128   ;;  %s1035_s25 = int_to_ptr.hbm [resolvable:$true] %s1034_s25 }
  0x18   :  { %639 = vmatpush.bf16.msra.mxu2 %v1363_v23  ;;  %v1362_v27 = vld [vmem:[%s1820_s4 + $0x88] sm:$0xff]  ;;  %v1361_v31 = vld [vmem:[%s1820_s4 + $0x80] sm:$0xff]  ;;  %v1392_v34 = vld [vmem:[%s1820_s4 + $0x178] sm:$0xff]  ;;  %v1466_v23 = vmov 1   ;;  %s1469_s1 = smov 8  }
  0x19   :  { %652 = vmatpush.bf16.msra.mxu3 %v1371_v24  ;;  %v1370_v28 = vld [vmem:[%s1820_s4 + $0xc8] sm:$0xff]  ;;  %v1369_v32 = vld [vmem:[%s1820_s4 + $0xc0] sm:$0xff]  ;;  %v1400_v35 = vld [vmem:[%s1820_s4 + $0x1b8] sm:$0xff]  ;;  %1424 = vset.pattern.permute.xlu1 %v1466_v23 }
  0x1a   :  { %614 = vmatpush.bf16.msra.mxu0 %v1346_v25  ;;  %v1408_v36 = vld [vmem:[%s1820_s4 + $0x1f8] sm:$0xff]  ;;  %v1383_v37 = vld [vmem:[%s1820_s4 + $0x130] sm:$0xff]  ;;  %v208_v39 = vld [vmem:[#allocation1] sm:$0xff] }
  0x1b   :  { %627 = vmatpush.bf16.msra.mxu1 %v1354_v26  ;;  %v210_v38 = vld [vmem:[#allocation1 + $0x12] sm:$0xff]  ;;  %v211_v41 = vld [vmem:[#allocation1 + $0x1b] sm:$0xff]  ;;  %v209_v42 = vld [vmem:[#allocation1 + $0x9] sm:$0xff] }
  0x1c   :  { %640 = vmatpush.bf16.msra.mxu2 %v1362_v27  ;;  %v1391_v40 = vld [vmem:[%s1820_s4 + $0x170] sm:$0xff]  ;;  %v1382_v45 = vld [vmem:[%s1820_s4 + $0x128] sm:$0xff]  ;;  %v1381_v49 = vld [vmem:[%s1820_s4 + $0x120] sm:$0xff] }
  0x1d   :  { %653 = vmatpush.bf16.msra.mxu3 %v1370_v28  ;;  %v1399_v43 = vld [vmem:[%s1820_s4 + $0x1b0] sm:$0xff]  ;;  %v1390_v46 = vld [vmem:[%s1820_s4 + $0x168] sm:$0xff]  ;;  %v1389_v50 = vld [vmem:[%s1820_s4 + $0x160] sm:$0xff] }
  0x1e   :  { %615 = vmatpush.bf16.msra.mxu0 %v1345_v29  ;;  %v1407_v44 = vld [vmem:[%s1820_s4 + $0x1f0] sm:$0xff]  ;;  %v1398_v47 = vld [vmem:[%s1820_s4 + $0x1a8] sm:$0xff]  ;;  %v1397_v51 = vld [vmem:[%s1820_s4 + $0x1a0] sm:$0xff] }
  0x1f   :  { %628 = vmatpush.bf16.msra.mxu1 %v1353_v30  ;;  %v1406_v48 = vld [vmem:[%s1820_s4 + $0x1e8] sm:$0xff]  ;;  %v1405_v52 = vld [vmem:[%s1820_s4 + $0x1e0] sm:$0xff]  ;;  %v1380_v53 = vld [vmem:[%s1820_s4 + $0x118] sm:$0xff] }
  0x20   :  { %641 = vmatpush.bf16.msra.mxu2 %v1361_v31  ;;  %v1388_v54 = vld [vmem:[%s1820_s4 + $0x158] sm:$0xff]  ;;  %v1379_v57 = vld [vmem:[%s1820_s4 + $0x110] sm:$0xff]  ;;  %v1378_v61 = vld [vmem:[%s1820_s4 + $0x108] sm:$0xff] }
  0x21   :  { %654 = vmatpush.bf16.msra.mxu3 %v1369_v32  ;;  %616 = vmatmul.bf16.vlgmr.msra.gmra.mxu0 %v208_v39  ;;  %v1396_v55 = vld [vmem:[%s1820_s4 + $0x198] sm:$0xff]  ;;  %v1387_v58 = vld [vmem:[%s1820_s4 + $0x150] sm:$0xff]  ;;  %v1386_v62 = vld [vmem:[%s1820_s4 + $0x148] sm:$0xff] }
  0x22   :  { %660 = vmatpush.bf16.msrb.mxu0 %v1384_v33  ;;  %629 = vmatmul.bf16.vlgmr.msra.gmra.mxu1 %v209_v42  ;;  %v1404_v56 = vld [vmem:[%s1820_s4 + $0x1d8] sm:$0xff]  ;;  %v1395_v59 = vld [vmem:[%s1820_s4 + $0x190] sm:$0xff]  ;;  %v1394_v63 = vld [vmem:[%s1820_s4 + $0x188] sm:$0xff] }
  0x23   :  { %673 = vmatpush.bf16.msrb.mxu1 %v1392_v34  ;;  %642 = vmatmul.bf16.vlgmr.msra.gmra.mxu2 %v210_v38  ;;  %v1403_v60 = vld [vmem:[%s1820_s4 + $0x1d0] sm:$0xff]  ;;  %v1402_v0 = vld [vmem:[%s1820_s4 + $0x1c8] sm:$0xff]  ;;  %v1377_v1 = vld [vmem:[%s1820_s4 + $0x100] sm:$0xff] }
  0x24   :  { %686 = vmatpush.bf16.msrb.mxu2 %v1400_v35  ;;  %655 = vmatmul.bf16.vlgmr.msra.gmra.mxu3 %v211_v41  ;;  %v1385_v2 = vld [vmem:[%s1820_s4 + $0x140] sm:$0xff]  ;;  %v213_v6 = vld [vmem:[#allocation1 + $0x2d] sm:$0xff]  ;;  %v214_v7 = vld [vmem:[#allocation1 + $0x36] sm:$0xff] }
  0x25   :  { %699 = vmatpush.bf16.msrb.mxu3 %v1408_v36  ;;  %v1393_v3 = vld [vmem:[%s1820_s4 + $0x180] sm:$0xff]  ;;  %v1413_v9 = vld [vmem:[%s1822_s6 + $0x8] sm:$0xff] }
  0x26   :  { %661 = vmatpush.bf16.msrb.mxu0 %v1383_v37  ;;  %v1401_v4 = vld [vmem:[%s1820_s4 + $0x1c0] sm:$0xff]  ;;  %v1410_v10 = vld [vmem:[%s1821_s5 + $0x8] sm:$0xff] }
  0x27   :  { %674 = vmatpush.bf16.msrb.mxu1 %v1391_v40  ;;  %v212_v5 = vld [vmem:[#allocation1 + $0x24] sm:$0xff]  ;;  %v43_v13 = vld [vmem:[%s1818_s2] sm:$0x3] }
  0x28   :  { %687 = vmatpush.bf16.msrb.mxu2 %v1399_v43  ;;  %v215_v8 = vld [vmem:[#allocation1 + $0x3f] sm:$0xff]  ;;  %47 = vperm.xlu0 %1423, %v43_v13  }
  0x29   :  { %700 = vmatpush.bf16.msrb.mxu3 %v1407_v44  ;;  %v1412_v11 = vld [vmem:[%s1822_s6] sm:$0xff]  ;;  %v1417_v13 = vld [vmem:[%s1826_s10 + $0x18] sm:$0xff] }
  0x2a   :  { %662 = vmatpush.bf16.msrb.mxu0 %v1382_v45  ;;  %v1411_v14 = vld [vmem:[%s1816_s0] sm:$0xff] }
  0x2b   :  { %675 = vmatpush.bf16.msrb.mxu1 %v1390_v46  ;;  %v1409_v16 = vld [vmem:[%s1821_s5] sm:$0xff] }
  0x2c   :  { %688 = vmatpush.bf16.msrb.mxu2 %v1398_v47  ;;  %v59_v20 = vld [vmem:[%s1819_s3] sm:$0x3] }
  0x2d   :  { %701 = vmatpush.bf16.msrb.mxu3 %v1406_v48  ;;  %71 = vperm.xlu1 %1424, %v59_v20   ;;  %v1426_v43 = vld [vmem:[%s1823_s7] ss:$0 sm:$0xff] }
  0x2e   :  { %663 = vmatpush.bf16.msrb.mxu0 %v1381_v49  ;;  %v1427_v44 = vld [vmem:[%s1825_s9] ss:$0 sm:$0xff] }
  0x2f   :  { %676 = vmatpush.bf16.msrb.mxu1 %v1389_v50  ;;  %v1428_v46 = vld [vmem:[%s1824_s8] ss:$0 sm:$0xff]  ;;  %v1429_v50 = vld [vmem:[%s1824_s8 + $0x1] ss:$0 sm:$0xff] }
  0x30   :  { %689 = vmatpush.bf16.msrb.mxu2 %v1397_v51  ;;  %63 = vperm.xlu0 %1423, %v59_v20   ;;  %v1416_v20 = vld [vmem:[%s1826_s10 + $0x10] sm:$0xff] }
  0x31   :  { %702 = vmatpush.bf16.msrb.mxu3 %v1405_v52 }
  0x32   :  { %664 = vmatpush.bf16.msrb.mxu0 %v1380_v53 }
  0x33   :  { %677 = vmatpush.bf16.msrb.mxu1 %v1388_v54 }
  0x34   :  { %690 = vmatpush.bf16.msrb.mxu2 %v1396_v55 }
  0x35   :  { %703 = vmatpush.bf16.msrb.mxu3 %v1404_v56 }
  0x36   :  { %665 = vmatpush.bf16.msrb.mxu0 %v1379_v57 }
  0x37   :  { %678 = vmatpush.bf16.msrb.mxu1 %v1387_v58 }
  0x38   :  { %691 = vmatpush.bf16.msrb.mxu2 %v1395_v59  ;;  %1425 = vset.pattern.permute.xlu0 %v1466_v23 }
  0x39   :  { %704 = vmatpush.bf16.msrb.mxu3 %v1403_v60 }
  0x3a   :  { %666 = vmatpush.bf16.msrb.mxu0 %v1378_v61 }
  0x3b   :  { %679 = vmatpush.bf16.msrb.mxu1 %v1386_v62 }
  0x3c   :  { %692 = vmatpush.bf16.msrb.mxu2 %v1394_v63 }
  0x3d   :  { %705 = vmatpush.bf16.msrb.mxu3 %v1402_v0 }
  0x3e   :  { %667 = vmatpush.bf16.msrb.mxu0 %v1377_v1 }
  0x3f   :  { %680 = vmatpush.bf16.msrb.mxu1 %v1385_v2 }
  0x40   :  { %693 = vmatpush.bf16.msrb.mxu2 %v1393_v3 }
  0x41   :  { %706 = vmatpush.bf16.msrb.mxu3 %v1401_v4  ;;  %668 = vmatmul.bf16.vlgmr.msrb.gmra.mxu0 %v212_v5 }
  0x42   :  { %681 = vmatmul.bf16.vlgmr.msrb.gmra.mxu1 %v213_v6  ;;  %739 = vmatpush.bf16.msra.mxu0 %v1410_v10 }
  0x43   :  { %694 = vmatmul.bf16.vlgmr.msrb.gmra.mxu2 %v214_v7  ;;  %779 = vmatpush.bf16.msra.mxu1 %v1413_v9 }
  0x44   :  { %707 = vmatmul.bf16.vlgmr.msrb.gmra.mxu3 %v215_v8  ;;  %928 = vmatpush.bf16.msra.mxu2 %v1417_v13 }
  0x46   :  { %740 = vmatpush.bf16.msra.mxu0 %v1409_v16 }
  0x47   :  { %780 = vmatpush.bf16.msra.mxu1 %v1412_v11 }
  0x48   :  { %929 = vmatpush.bf16.msra.mxu2 %v1416_v20 }
  0x52   :  { %1323 = vmatmul.msk.bf16.vlgmr.msra.gmra.mxu1 %vm729_vm0, %v1411_v14 }
  0x9a   :  { %v48_v42 = vpop.permute.xlu0 %47 }
  0x9b   :  { %v53_v45 = vmul.f32 %v1426_v43, %v48_v42 }
  0x9d   :  { %v58_v48 = vadd.f32 %v1427_v44, %v53_v45 }
  0x9e   :  { %v617_v15 = vpop.f32.mrf.mxu0 }
  0x9f   :  { %v630_v17 = vpop.f32.mrf.mxu1  ;;  %v72_v51 = vpop.permute.xlu1 %71 }
  0xa0   :  { %v631_v26 = vadd.f32 %v630_v17, %v617_v15  ;;  %v75_v53 = vmul.f32 %v1429_v50, %v72_v51 }
  0xa2   :  { %v64_v47 = vpop.permute.xlu0 %63 }
  0xa3   :  { %v67_v49 = vmul.f32 %v1428_v46, %v64_v47 }
  0xa5   :  { %v68_v52 = vadd.f32 %v67_v49, %v58_v48 }
  0xa6   :  { %v643_v18 = vpop.f32.mrf.mxu2  ;;  %v619_v21 = vpop.f32.mrf.mxu0 }
  0xa7   :  { %v656_v19 = vpop.f32.mrf.mxu3  ;;  %v632_v22 = vpop.f32.mrf.mxu1  ;;  %v644_v27 = vadd.f32 %v643_v18, %v631_v26  ;;  %v76_v55 = vadd.f32 %v75_v53, %v68_v52 }
  0xa9   :  { %v657_v28 = vadd.f32 %v656_v19, %v644_v27  ;;  %v1415_v27 = vld [vmem:[%s1826_s10 + $0x8] sm:$0xff] }
  0xaa   :  { %930 = vmatpush.bf16.msra.mxu2 %v1415_v27 }
  0xae   :  { %v645_v24 = vpop.f32.mrf.mxu2 }
  0xaf   :  { %v658_v25 = vpop.f32.mrf.mxu3 }
  0xbe   :  { %v669_v29 = vpop.f32.mrf.mxu0 }
  0xbf   :  { %v682_v30 = vpop.f32.mrf.mxu1  ;;  %v670_v31 = vadd.f32 %v669_v29, %v657_v28 }
  0xc1   :  { %v683_v32 = vadd.f32 %v682_v30, %v670_v31 }
  0xc6   :  { %v695_v33 = vpop.f32.mrf.mxu2  ;;  %v671_v36 = vpop.f32.mrf.mxu0 }
  0xc7   :  { %v708_v34 = vpop.f32.mrf.mxu3  ;;  %v696_v35 = vadd.f32 %v695_v33, %v683_v32  ;;  %v684_v37 = vpop.f32.mrf.mxu1 }
  0xc9   :  { %v709_v38 = vadd.f32 %v708_v34, %v696_v35  ;;  %v1414_v34 = vld [vmem:[%s1826_s10] sm:$0xff] }
  0xca   :  { %931 = vmatpush.bf16.msra.mxu2 %v1414_v34 }
  0xcb   :  { %v712_v39 = vpack.c.bf16 %v709_v38, %v709_v38 }
  0xcd   :  { %1310 = vmatmul.msk.bf16.vlgmr.msra.gmra.mxu0 %vm729_vm0, %v712_v39 }
  0xce   :  { %v697_v40 = vpop.f32.mrf.mxu2 }
  0xcf   :  { %v710_v41 = vpop.f32.mrf.mxu3  ;;  %v782_v54 = vpop.f32.mrf.mxu1 }
  0xd7   :  { %v784_v62 = vpop.f32.mrf.mxu1 }
 0x14a   :  { %v742_v56 = vpop.f32.mrf.mxu0 }
 0x14b   :  { %v746_v57 = vadd.f32 %v742_v56, %v76_v55 }
 0x14d   :  { %v788_v58 = vrot.slane %v746_v57, 1  ;;  %v789_v59 = vperm.slane %v746_v57, 0 }
 0x14f   :  { %v790_v60 = vperm.slane %v788_v58, 0  ;;  %v1765_v61 = vadd.f32 %v789_v59, %v782_v54 }
 0x151   :  { %v1767_v63 = vadd.f32 %v790_v60, %v784_v62  ;;  %v1770_v0 = vmul.f32 0.70710677, %v1765_v61 }
 0x152   :  { %v744_v1 = vpop.f32.mrf.mxu0 }
 0x153   :  { %v1773_v2 = vmul.f32 0.70710677, %v1767_v63  ;;  %v799_v3 = vmul.f32 %v1770_v0, %v1770_v0 }
 0x155   :  { %v800_v4 = vmin.f32 %v799_v3, 16.0  ;;  %v839_v5 = vmul.f32 %v1773_v2, %v1773_v2 }
 0x157   :  { %v801_v6 = vmul.f32 2.1237322e-06, %v800_v4  ;;  %v812_v7 = vmul.f32 3.8918573e-05, %v800_v4  ;;  %v840_v8 = vmin.f32 %v839_v5, 16.0 }
 0x159   :  { %v802_v9 = vadd.f32 0.00028619796, %v801_v6  ;;  %v813_v10 = vadd.f32 0.001143296, %v812_v7  ;;  %v841_v11 = vmul.f32 2.1237322e-06, %v840_v8 }
 0x15a   :  { %v852_v12 = vmul.f32 3.8918573e-05, %v840_v8 }
 0x15b   :  { %v803_v14 = vmul.f32 %v802_v9, %v800_v4  ;;  %v814_v15 = vmul.f32 %v813_v10, %v800_v4  ;;  %v842_v16 = vadd.f32 0.00028619796, %v841_v11 }
 0x15c   :  { %v853_v17 = vadd.f32 0.001143296, %v852_v12 }
 0x15d   :  { %v815_v18 = vadd.f32 0.014752088, %v814_v15  ;;  %v843_v19 = vmul.f32 %v842_v16, %v840_v8  ;;  %v804_v21 = vadd.f32 0.0036580483, %v803_v14 }
 0x15e   :  { %v854_v22 = vmul.f32 %v853_v17, %v840_v8 }
 0x15f   :  { %v816_v23 = vmul.f32 %v815_v18, %v800_v4  ;;  %v844_v24 = vadd.f32 0.0036580483, %v843_v19  ;;  %v805_v28 = vmul.f32 %v804_v21, %v800_v4  ;;  %v795_v18 = vmul.f32 0.5, %v1765_v61 }
 0x160   :  { %v855_v25 = vadd.f32 0.014752088, %v854_v22 }
 0x161   :  { %v817_v26 = vadd.f32 0.112945676, %v816_v23  ;;  %v845_v31 = vmul.f32 %v844_v24, %v840_v8  ;;  %v806_v35 = vadd.f32 0.05243302, %v805_v28 }
 0x162   :  { %v856_v29 = vmul.f32 %v855_v25, %v840_v8 }
 0x163   :  { %v818_v30 = vmul.f32 %v817_v26, %v800_v4  ;;  %v846_v38 = vadd.f32 0.05243302, %v845_v31  ;;  %v807_v41 = vmul.f32 %v806_v35, %v800_v4 }
 0x164   :  { %v857_v32 = vadd.f32 0.112945676, %v856_v29 }
 0x165   :  { %v819_v33 = vadd.f32 0.4994258, %v818_v30  ;;  %v847_v43 = vmul.f32 %v846_v38, %v840_v8  ;;  %v808_v45 = vadd.f32 0.18741608, %v807_v41 }
 0x166   :  { %v858_v36 = vmul.f32 %v857_v32, %v840_v8 }
 0x167   :  { %v820_v37 = vmul.f32 %v819_v33, %v800_v4  ;;  %v848_v46 = vadd.f32 0.18741608, %v847_v43  ;;  %v809_v48 = vmul.f32 %v808_v45, %v800_v4 }
 0x168   :  { %v859_v39 = vadd.f32 0.4994258, %v858_v36 }
 0x169   :  { %v821_v40 = vadd.f32 1.0, %v820_v37  ;;  %v849_v52 = vmul.f32 %v848_v46, %v840_v8  ;;  %v810_v55 = vadd.f32 1.1283791, %v809_v48 }
 0x16a   :  { %v860_v42 = vmul.f32 %v859_v39, %v840_v8 }
 0x16b   :  { %1431 = vrcp.f32 %v821_v40  ;;  %v833_v53 = vand.u32 2147483648, %v821_v40  ;;  %v831_v57 = vand.u32 2147483647, %v821_v40  ;;  %vm827_vm2 = vweird.f32 %v821_v40 }
 0x16c   :  { %v861_v44 = vadd.f32 1.0, %v860_v42  ;;  %v850_v60 = vadd.f32 1.1283791, %v849_v52  ;;  %v811_v5 = vmul.f32 %v810_v55, %v1770_v0  ;;  %v796_v0 = vmul.f32 0.5, %v1767_v63 }
 0x16d   :  { %v834_v1 = vor.u32 1.1754944e-38, %v833_v53  ;;  %vm832_vm5 = vcmp.eq.f32.partialorder %v831_v57, 8.507059e+37 }
 0x16e   :  { %1433 = vrcp.f32 %v861_v44  ;;  %v873_v62 = vand.u32 2147483648, %v861_v44  ;;  %v871_v4 = vand.u32 2147483647, %v861_v44  ;;  %vm867_vm6 = vweird.f32 %v861_v44 }
 0x16f   :  { %v851_v11 = vmul.f32 %v850_v60, %v1773_v2  ;;  %v1430_v2 = vld [vmem:[%s1827_s11] ss:$0 sm:$0xff]  ;;  %s1467_s11 = smov [#allocation2]  }
 0x170   :  { %v874_v10 = vor.u32 1.1754944e-38, %v873_v62  ;;  %vm872_vm8 = vcmp.eq.f32.partialorder %v871_v4, 8.507059e+37  ;;  %s1032_s23 = sshll.u32 %s1467_s11, 4  ;;  %s1033_s23 = int_to_ptr.vmem [resolvable:$true] %s1032_s23 }
 0x171   :  { %v1432_v47 = vpop.eup %1431 }
 0x172   :  { %v823_v49 = vmul.f32 %v1432_v47, %v821_v40  ;;  %vm828_vm1 = vweird.f32 %v1432_v47 }
 0x173   :  { %vm829_vm3 = vmor %vm827_vm2, %vm828_vm1 }
 0x174   :  { %v1434_v50 = vpop.eup %1433  ;;  %v824_v51 = vsub.f32 1.0, %v823_v49 }
 0x175   :  { %v863_v54 = vmul.f32 %v1434_v50, %v861_v44  ;;  %vm868_vm4 = vweird.f32 %v1434_v50 }
 0x176   :  { %v825_v56 = vmul.f32 %v1432_v47, %v824_v51  ;;  %vm869_vm7 = vmor %vm867_vm6, %vm868_vm4 }
 0x177   :  { %v864_v58 = vsub.f32 1.0, %v863_v54 }
 0x178   :  { %v826_v59 = vadd.f32 %v1432_v47, %v825_v56 }
 0x179   :  { %v865_v3 = vmul.f32 %v1434_v50, %v864_v58 }
 0x17a   :  { %v830_v6 = vsel %vm829_vm3, %v1432_v47, %v826_v59 }
 0x17b   :  { %v835_v7 = vsel %vm832_vm5, %v834_v1, %v830_v6  ;;  %v866_v8 = vadd.f32 %v1434_v50, %v865_v3 }
 0x17c   :  { %v836_v9 = vmul.f32 %v835_v7, %v811_v5 }
 0x17d   :  { %v870_v12 = vsel %vm869_vm7, %v1434_v50, %v866_v8 }
 0x17e   :  { %v1324_v13 = vclamps-f32 %v836_v9, 1.0  ;;  %v875_v14 = vsel %vm872_vm8, %v874_v10, %v870_v12 }
 0x17f   :  { %v876_v15 = vmul.f32 %v875_v14, %v851_v11 }
 0x180   :  { %v879_v17 = vadd.f32 1.0, %v1324_v13 }
 0x181   :  { %v1325_v16 = vclamps-f32 %v876_v15, 1.0 }
 0x182   :  { %v881_v20 = vmul.f32 %v879_v17, %v795_v18 }
 0x183   :  { %v880_v19 = vadd.f32 1.0, %v1325_v16 }
 0x185   :  { %v882_v21 = vmul.f32 %v880_v19, %v796_v0 }
 0x187   :  { %v883_v22 = vpack.c.bf16 %v882_v21, %v881_v20 }
 0x189   :  { %1342 = vmatmul.msk.bf16.vlgmr.msra.gmra.mxu2 %vm920_vm9, %v883_v22 }
 0x20c   :  { %v933_v23 = vpop.f32.mrf.mxu2 }
 0x20d   :  { %v1798_v24 = vadd.f32 %v1430_v2, %v933_v23 }
 0x20f   :  { %v940_v25 = vmul.f32 0.70710677, %v1798_v24 }
 0x211   :  { %v942_v26 = vmul.f32 %v940_v25, %v940_v25 }
 0x213   :  { %v943_v27 = vmin.f32 %v942_v26, 16.0 }
 0x214   :  { %v935_v61 = vpop.f32.mrf.mxu2 }
 0x215   :  { %v944_v28 = vmul.f32 2.1237322e-06, %v943_v27  ;;  %v955_v63 = vmul.f32 3.8918573e-05, %v943_v27  ;;  %v1801_v29 = vadd.f32 %v1430_v2, %v935_v61 }
 0x217   :  { %v945_v30 = vadd.f32 0.00028619796, %v944_v28  ;;  %v956_v31 = vadd.f32 0.001143296, %v955_v63  ;;  %v1804_v32 = vmul.f32 0.70710677, %v1801_v29 }
 0x218   :  { %v938_v63 = vmul.f32 0.5, %v1798_v24  ;;  %v939_v24 = vmul.f32 0.5, %v1801_v29 }
 0x219   :  { %v946_v33 = vmul.f32 %v945_v30, %v943_v27  ;;  %v957_v34 = vmul.f32 %v956_v31, %v943_v27  ;;  %v982_v35 = vmul.f32 %v1804_v32, %v1804_v32 }
 0x21b   :  { %v958_v36 = vadd.f32 0.014752088, %v957_v34  ;;  %v947_v37 = vadd.f32 0.0036580483, %v946_v33  ;;  %v983_v38 = vmin.f32 %v982_v35, 16.0 }
 0x21d   :  { %v959_v39 = vmul.f32 %v958_v36, %v943_v27  ;;  %v984_v40 = vmul.f32 2.1237322e-06, %v983_v38  ;;  %v995_v41 = vmul.f32 3.8918573e-05, %v983_v38  ;;  %v948_v43 = vmul.f32 %v947_v37, %v943_v27 }
 0x21f   :  { %v960_v42 = vadd.f32 0.112945676, %v959_v39  ;;  %v985_v44 = vadd.f32 0.00028619796, %v984_v40  ;;  %v996_v45 = vadd.f32 0.001143296, %v995_v41 }
 0x220   :  { %v949_v50 = vadd.f32 0.05243302, %v948_v43 }
 0x221   :  { %v961_v46 = vmul.f32 %v960_v42, %v943_v27  ;;  %v986_v47 = vmul.f32 %v985_v44, %v983_v38  ;;  %v997_v48 = vmul.f32 %v996_v45, %v983_v38 }
 0x222   :  { %v950_v56 = vmul.f32 %v949_v50, %v943_v27 }
 0x223   :  { %v962_v49 = vadd.f32 0.4994258, %v961_v46  ;;  %v998_v51 = vadd.f32 0.014752088, %v997_v48  ;;  %v987_v53 = vadd.f32 0.0036580483, %v986_v47 }
 0x224   :  { %v951_v60 = vadd.f32 0.18741608, %v950_v56 }
 0x225   :  { %v963_v52 = vmul.f32 %v962_v49, %v943_v27  ;;  %v999_v54 = vmul.f32 %v998_v51, %v983_v38  ;;  %v988_v58 = vmul.f32 %v987_v53, %v983_v38 }
 0x226   :  { %v952_v5 = vmul.f32 %v951_v60, %v943_v27 }
 0x227   :  { %v964_v55 = vadd.f32 1.0, %v963_v52  ;;  %v1000_v57 = vadd.f32 0.112945676, %v999_v54  ;;  %v989_v1 = vadd.f32 0.05243302, %v988_v58 }
 0x228   :  { %v953_v11 = vadd.f32 1.1283791, %v952_v5 }
 0x229   :  { %1435 = vrcp.f32 %v964_v55  ;;  %v1001_v59 = vmul.f32 %v1000_v57, %v983_v38  ;;  %v990_v8 = vmul.f32 %v989_v1, %v983_v38  ;;  %v976_v10 = vand.u32 2147483648, %v964_v55 }
 0x22a   :  { %v974_v13 = vand.u32 2147483647, %v964_v55  ;;  %vm970_vm11 = vweird.f32 %v964_v55  ;;  %v954_v18 = vmul.f32 %v953_v11, %v940_v25 }
 0x22b   :  { %v1002_v62 = vadd.f32 0.4994258, %v1001_v59  ;;  %v991_v14 = vadd.f32 0.18741608, %v990_v8  ;;  %v977_v16 = vor.u32 1.1754944e-38, %v976_v10 }
 0x22c   :  { %vm975_vm13 = vcmp.eq.f32.partialorder %v974_v13, 8.507059e+37 }
 0x22d   :  { %v1003_v3 = vmul.f32 %v1002_v62, %v983_v38  ;;  %v992_v20 = vmul.f32 %v991_v14, %v983_v38 }
 0x22f   :  { %v1436_v4 = vpop.eup %1435  ;;  %v1004_v7 = vadd.f32 1.0, %v1003_v3  ;;  %v993_v27 = vadd.f32 1.1283791, %v992_v20 }
 0x230   :  { %v966_v6 = vmul.f32 %v1436_v4, %v964_v55  ;;  %vm971_vm10 = vweird.f32 %v1436_v4 }
 0x231   :  { %1437 = vrcp.f32 %v1004_v7  ;;  %vm972_vm12 = vmor %vm970_vm11, %vm971_vm10  ;;  %v1016_v26 = vand.u32 2147483648, %v1004_v7  ;;  %v1014_v28 = vand.u32 2147483647, %v1004_v7  ;;  %vm1010_vm15 = vweird.f32 %v1004_v7 }
 0x232   :  { %v967_v9 = vsub.f32 1.0, %v966_v6  ;;  %v994_v34 = vmul.f32 %v993_v27, %v1804_v32 }
 0x233   :  { %v1017_v25 = vor.u32 1.1754944e-38, %v1016_v26  ;;  %vm1015_vm2 = vcmp.eq.f32.partialorder %v1014_v28, 8.507059e+37 }
 0x234   :  { %v968_v12 = vmul.f32 %v1436_v4, %v967_v9 }
 0x236   :  { %v969_v15 = vadd.f32 %v1436_v4, %v968_v12 }
 0x237   :  { %v1438_v17 = vpop.eup %1437 }
 0x238   :  { %v973_v0 = vsel %vm972_vm12, %v1436_v4, %v969_v15  ;;  %v1006_v21 = vmul.f32 %v1438_v17, %v1004_v7  ;;  %vm1011_vm14 = vweird.f32 %v1438_v17 }
 0x239   :  { %v978_v19 = vsel %vm975_vm13, %v977_v16, %v973_v0  ;;  %vm1012_vm1 = vmor %vm1010_vm15, %vm1011_vm14 }
 0x23a   :  { %v979_v22 = vmul.f32 %v978_v19, %v954_v18  ;;  %v1007_v2 = vsub.f32 1.0, %v1006_v21 }
 0x23c   :  { %v1343_v23 = vclamps-f32 %v979_v22, 1.0  ;;  %v1008_v61 = vmul.f32 %v1438_v17, %v1007_v2 }
 0x23e   :  { %v1022_v30 = vadd.f32 1.0, %v1343_v23  ;;  %v1009_v31 = vadd.f32 %v1438_v17, %v1008_v61 }
 0x240   :  { %v1024_v33 = vmul.f32 %v1022_v30, %v938_v63  ;;  %v1013_v35 = vsel %vm1012_vm1, %v1438_v17, %v1009_v31 }
 0x241   :  { %v1018_v36 = vsel %vm1015_vm2, %v1017_v25, %v1013_v35 }
 0x242   :  { %1026 = vst.msk [vmem:[#allocation2] sm:$0xff] %vm729_vm0, %v1024_v33  ;;  %v1019_v37 = vmul.f32 %v1018_v36, %v994_v34 }
 0x244   :  { %v1344_v38 = vclamps-f32 %v1019_v37, 1.0 }
 0x246   :  { %v1023_v39 = vadd.f32 1.0, %v1344_v38 }
 0x248   :  { %v1025_v40 = vmul.f32 %v1023_v39, %v939_v24 }
 0x24a   :  { %1027 = vst.msk [vmem:[#allocation2 + $0x8] sm:$0xff] %vm729_vm0, %v1025_v40 }
 0x24b   :  { %1040 = dma.vmem_to_hbm [thread:$0]  %s1033_s23, 256, %s1035_s25, [#allocation3], %s1468_s26, %s1468_s26, %s1469_s1  }
 0x24c   :  { %1463 = dma.done.wait [#allocation3], 256  }
 0x24d   :  { %1464 = vsyncadd [#allocation3], 4294967040 }
 0x24e   :  { %1045 = vsyncpa [#allocation3], 1 }

// kernel: tpu_custom_call.1
= control target key start
LH: loop header
LB: loop body
LE: loop exit
PB: predicated region body
PF: predicated region fallthrough
CT: control target
= control target key end

     0   :  { %s1816_s0 = inlined_call_operand.vmem [shape: bf16[16,32], index: 0, kind: input, shape index: {}]   ;;  %s1817_s1 = inlined_call_operand.vmem [shape: bf16[2,1024], index: 1, kind: input, shape index: {}]   ;;  %s1818_s2 = inlined_call_operand.vmem [shape: f32[2,1], index: 2, kind: input, shape index: {}]   ;;  %s1819_s3 = inlined_call_operand.vmem [shape: f32[2,2], index: 3, kind: input, shape index: {}]   ;;  %s1820_s4 = inlined_call_operand.vmem [shape: bf16[1024,32], index: 4, kind: input, shape index: {}]   ;;  %s1821_s5 = inlined_call_operand.vmem [shape: bf16[32,64], index: 5, kind: input, shape index: {}]   ;;  %s1822_s6 = inlined_call_operand.vmem [shape: bf16[32,64], index: 6, kind: input, shape index: {}]   ;;  %s1823_s7 = inlined_call_operand.vmem [shape: f32[1,64], index: 7, kind: input, shape index: {}]   ;;  %s1824_s8 = inlined_call_operand.vmem [shape: f32[2,64], index: 8, kind: input, shape index: {}]   ;;  %s1825_s9 = inlined_call_operand.vmem [shape: f32[1,64], index: 9, kind: input, shape index: {}]   ;;  %s1826_s10 = inlined_call_operand.vmem [shape: bf16[64,32], index: 10, kind: input, shape index: {}]   ;;  %s1827_s11 = inlined_call_operand.vmem [shape: f32[1,32], index: 11, kind: input, shape index: {}]   ;;  %s1828_s12 = inlined_call_operand.hbm [shape: f32[16,32], index: 12, kind: output, shape index: {}]  }
   0x1   :  { %v1352_v0 = vld [vmem:[%s1820_s4 + $0x38] sm:$0xff]  ;;  %v1351_v4 = vld [vmem:[%s1820_s4 + $0x30] sm:$0xff]  ;;  %v1350_v8 = vld [vmem:[%s1820_s4 + $0x28] sm:$0xff] }
   0x2   :  { %v1360_v1 = vld [vmem:[%s1820_s4 + $0x78] sm:$0xff]  ;;  %608 = vmatpush.bf16.msra.mxu0 %v1352_v0  ;;  %v1359_v5 = vld [vmem:[%s1820_s4 + $0x70] sm:$0xff]  ;;  %v1358_v9 = vld [vmem:[%s1820_s4 + $0x68] sm:$0xff] }
   0x3   :  { %v1368_v2 = vld [vmem:[%s1820_s4 + $0xb8] sm:$0xff]  ;;  %621 = vmatpush.bf16.msra.mxu1 %v1360_v1  ;;  %v1367_v6 = vld [vmem:[%s1820_s4 + $0xb0] sm:$0xff]  ;;  %v1366_v10 = vld [vmem:[%s1820_s4 + $0xa8] sm:$0xff] }
   0x4   :  { %v1376_v3 = vld [vmem:[%s1820_s4 + $0xf8] sm:$0xff]  ;;  %634 = vmatpush.bf16.msra.mxu2 %v1368_v2  ;;  %v1375_v7 = vld [vmem:[%s1820_s4 + $0xf0] sm:$0xff]  ;;  %v1374_v11 = vld [vmem:[%s1820_s4 + $0xe8] sm:$0xff] }
   0x5   :  { %647 = vmatpush.bf16.msra.mxu3 %v1376_v3  ;;  %v1349_v12 = vld [vmem:[%s1820_s4 + $0x20] sm:$0xff]  ;;  %v1348_v17 = vld [vmem:[%s1820_s4 + $0x18] sm:$0xff]  ;;  %v1347_v21 = vld [vmem:[%s1820_s4 + $0x10] sm:$0xff] }
   0x6   :  { %609 = vmatpush.bf16.msra.mxu0 %v1351_v4  ;;  %v1357_v13 = vld [vmem:[%s1820_s4 + $0x60] sm:$0xff]  ;;  %v1356_v18 = vld [vmem:[%s1820_s4 + $0x58] sm:$0xff]  ;;  %v1355_v22 = vld [vmem:[%s1820_s4 + $0x50] sm:$0xff] }
   0x7   :  { %622 = vmatpush.bf16.msra.mxu1 %v1359_v5  ;;  %v1365_v14 = vld [vmem:[%s1820_s4 + $0xa0] sm:$0xff]  ;;  %v1364_v19 = vld [vmem:[%s1820_s4 + $0x98] sm:$0xff]  ;;  %v1363_v23 = vld [vmem:[%s1820_s4 + $0x90] sm:$0xff] }
   0x8   :  { %635 = vmatpush.bf16.msra.mxu2 %v1367_v6  ;;  %v1373_v15 = vld [vmem:[%s1820_s4 + $0xe0] sm:$0xff]  ;;  %v1372_v20 = vld [vmem:[%s1820_s4 + $0xd8] sm:$0xff]  ;;  %v1371_v24 = vld [vmem:[%s1820_s4 + $0xd0] sm:$0xff] }
   0x9   :  { %648 = vmatpush.bf16.msra.mxu3 %v1375_v7  ;;  %v77_v16 = vld [vmem:[%s1817_s1] sm:$0xff] }
   0xa   :  { %610 = vmatpush.bf16.msra.mxu0 %v1350_v8  ;;  %207 = vst [vmem:[#allocation1] ss:$9 sm:$0xff] %v77_v16 }
   0xb   :  { %623 = vmatpush.bf16.msra.mxu1 %v1358_v9 }
   0xc   :  { %636 = vmatpush.bf16.msra.mxu2 %v1366_v10 }
   0xd   :  { %649 = vmatpush.bf16.msra.mxu3 %v1374_v11 }
   0xe   :  { %611 = vmatpush.bf16.msra.mxu0 %v1349_v12 }
   0xf   :  { %624 = vmatpush.bf16.msra.mxu1 %v1357_v13 }
  0x10   :  { %637 = vmatpush.bf16.msra.mxu2 %v1365_v14 }
  0x11   :  { %650 = vmatpush.bf16.msra.mxu3 %v1373_v15 }
  0x12   :  { %612 = vmatpush.bf16.msra.mxu0 %v1348_v17 }
  0x13   :  { %625 = vmatpush.bf16.msra.mxu1 %v1356_v18 }
  0x14   :  { %638 = vmatpush.bf16.msra.mxu2 %v1364_v19 }
  0x15   :  { %651 = vmatpush.bf16.msra.mxu3 %v1372_v20 }
  0x16   :  { %17 = vsyncpa [#allocation3], 0  ;;  %613 = vmatpush.bf16.msra.mxu0 %v1347_v21  ;;  %v1346_v25 = vld [vmem:[%s1820_s4 + $0x8] sm:$0xff]  ;;  %v1345_v29 = vld [vmem:[%s1820_s4] sm:$0xff]  ;;  %v1465_v12 = vmov 0   ;;  %vm729_vm0 = vcmask 261120  }
  0x17   :  { %626 = vmatpush.bf16.msra.mxu1 %v1355_v22  ;;  %v1354_v26 = vld [vmem:[%s1820_s4 + $0x48] sm:$0xff]  ;;  %v1353_v30 = vld [vmem:[%s1820_s4 + $0x40] sm:$0xff]  ;;  %v1384_v33 = vld [vmem:[%s1820_s4 + $0x138] sm:$0xff]  ;;  %1423 = vset.pattern.permute.xlu0 %v1465_v12  ;;  %vm920_vm9 = vcmask 523264   ;;  %s1034_s25 = sshll.u32 %s1828_s12, 4  ;;  %s1468_s26 = smov 128   ;;  %s1035_s25 = int_to_ptr.hbm [resolvable:$true] %s1034_s25 }
  0x18   :  { %639 = vmatpush.bf16.msra.mxu2 %v1363_v23  ;;  %v1362_v27 = vld [vmem:[%s1820_s4 + $0x88] sm:$0xff]  ;;  %v1361_v31 = vld [vmem:[%s1820_s4 + $0x80] sm:$0xff]  ;;  %v1392_v34 = vld [vmem:[%s1820_s4 + $0x178] sm:$0xff]  ;;  %v1466_v23 = vmov 1   ;;  %s1469_s1 = smov 8  }
  0x19   :  { %652 = vmatpush.bf16.msra.mxu3 %v1371_v24  ;;  %v1370_v28 = vld [vmem:[%s1820_s4 + $0xc8] sm:$0xff]  ;;  %v1369_v32 = vld [vmem:[%s1820_s4 + $0xc0] sm:$0xff]  ;;  %v1400_v35 = vld [vmem:[%s1820_s4 + $0x1b8] sm:$0xff]  ;;  %1424 = vset.pattern.permute.xlu1 %v1466_v23 }
  0x1a   :  { %614 = vmatpush.bf16.msra.mxu0 %v1346_v25  ;;  %v1408_v36 = vld [vmem:[%s1820_s4 + $0x1f8] sm:$0xff]  ;;  %v1383_v37 = vld [vmem:[%s1820_s4 + $0x130] sm:$0xff]  ;;  %v208_v39 = vld [vmem:[#allocation1] sm:$0xff] }
  0x1b   :  { %627 = vmatpush.bf16.msra.mxu1 %v1354_v26  ;;  %v210_v38 = vld [vmem:[#allocation1 + $0x12] sm:$0xff]  ;;  %v211_v41 = vld [vmem:[#allocation1 + $0x1b] sm:$0xff]  ;;  %v209_v42 = vld [vmem:[#allocation1 + $0x9] sm:$0xff] }
  0x1c   :  { %640 = vmatpush.bf16.msra.mxu2 %v1362_v27  ;;  %v1391_v40 = vld [vmem:[%s1820_s4 + $0x170] sm:$0xff]  ;;  %v1382_v45 = vld [vmem:[%s1820_s4 + $0x128] sm:$0xff]  ;;  %v1381_v49 = vld [vmem:[%s1820_s4 + $0x120] sm:$0xff] }
  0x1d   :  { %653 = vmatpush.bf16.msra.mxu3 %v1370_v28  ;;  %v1399_v43 = vld [vmem:[%s1820_s4 + $0x1b0] sm:$0xff]  ;;  %v1390_v46 = vld [vmem:[%s1820_s4 + $0x168] sm:$0xff]  ;;  %v1389_v50 = vld [vmem:[%s1820_s4 + $0x160] sm:$0xff] }
  0x1e   :  { %615 = vmatpush.bf16.msra.mxu0 %v1345_v29  ;;  %v1407_v44 = vld [vmem:[%s1820_s4 + $0x1f0] sm:$0xff]  ;;  %v1398_v47 = vld [vmem:[%s1820_s4 + $0x1a8] sm:$0xff]  ;;  %v1397_v51 = vld [vmem:[%s1820_s4 + $0x1a0] sm:$0xff] }
  0x1f   :  { %628 = vmatpush.bf16.msra.mxu1 %v1353_v30  ;;  %v1406_v48 = vld [vmem:[%s1820_s4 + $0x1e8] sm:$0xff]  ;;  %v1405_v52 = vld [vmem:[%s1820_s4 + $0x1e0] sm:$0xff]  ;;  %v1380_v53 = vld [vmem:[%s1820_s4 + $0x118] sm:$0xff] }
  0x20   :  { %641 = vmatpush.bf16.msra.mxu2 %v1361_v31  ;;  %v1388_v54 = vld [vmem:[%s1820_s4 + $0x158] sm:$0xff]  ;;  %v1379_v57 = vld [vmem:[%s1820_s4 + $0x110] sm:$0xff]  ;;  %v1378_v61 = vld [vmem:[%s1820_s4 + $0x108] sm:$0xff] }
  0x21   :  { %654 = vmatpush.bf16.msra.mxu3 %v1369_v32  ;;  %616 = vmatmul.bf16.vlgmr.msra.gmra.mxu0 %v208_v39  ;;  %v1396_v55 = vld [vmem:[%s1820_s4 + $0x198] sm:$0xff]  ;;  %v1387_v58 = vld [vmem:[%s1820_s4 + $0x150] sm:$0xff]  ;;  %v1386_v62 = vld [vmem:[%s1820_s4 + $0x148] sm:$0xff] }
  0x22   :  { %660 = vmatpush.bf16.msrb.mxu0 %v1384_v33  ;;  %629 = vmatmul.bf16.vlgmr.msra.gmra.mxu1 %v209_v42  ;;  %v1404_v56 = vld [vmem:[%s1820_s4 + $0x1d8] sm:$0xff]  ;;  %v1395_v59 = vld [vmem:[%s1820_s4 + $0x190] sm:$0xff]  ;;  %v1394_v63 = vld [vmem:[%s1820_s4 + $0x188] sm:$0xff] }
  0x23   :  { %673 = vmatpush.bf16.msrb.mxu1 %v1392_v34  ;;  %642 = vmatmul.bf16.vlgmr.msra.gmra.mxu2 %v210_v38  ;;  %v1403_v60 = vld [vmem:[%s1820_s4 + $0x1d0] sm:$0xff]  ;;  %v1402_v0 = vld [vmem:[%s1820_s4 + $0x1c8] sm:$0xff]  ;;  %v1377_v1 = vld [vmem:[%s1820_s4 + $0x100] sm:$0xff] }
  0x24   :  { %686 = vmatpush.bf16.msrb.mxu2 %v1400_v35  ;;  %655 = vmatmul.bf16.vlgmr.msra.gmra.mxu3 %v211_v41  ;;  %v1385_v2 = vld [vmem:[%s1820_s4 + $0x140] sm:$0xff]  ;;  %v213_v6 = vld [vmem:[#allocation1 + $0x2d] sm:$0xff]  ;;  %v214_v7 = vld [vmem:[#allocation1 + $0x36] sm:$0xff] }
  0x25   :  { %699 = vmatpush.bf16.msrb.mxu3 %v1408_v36  ;;  %v1393_v3 = vld [vmem:[%s1820_s4 + $0x180] sm:$0xff]  ;;  %v1413_v9 = vld [vmem:[%s1822_s6 + $0x8] sm:$0xff] }
  0x26   :  { %661 = vmatpush.bf16.msrb.mxu0 %v1383_v37  ;;  %v1401_v4 = vld [vmem:[%s1820_s4 + $0x1c0] sm:$0xff]  ;;  %v1410_v10 = vld [vmem:[%s1821_s5 + $0x8] sm:$0xff] }
  0x27   :  { %674 = vmatpush.bf16.msrb.mxu1 %v1391_v40  ;;  %v212_v5 = vld [vmem:[#allocation1 + $0x24] sm:$0xff]  ;;  %v43_v13 = vld [vmem:[%s1818_s2] sm:$0x3] }
  0x28   :  { %687 = vmatpush.bf16.msrb.mxu2 %v1399_v43  ;;  %v215_v8 = vld [vmem:[#allocation1 + $0x3f] sm:$0xff]  ;;  %47 = vperm.xlu0 %1423, %v43_v13  }
  0x29   :  { %700 = vmatpush.bf16.msrb.mxu3 %v1407_v44  ;;  %v1412_v11 = vld [vmem:[%s1822_s6] sm:$0xff]  ;;  %v1417_v13 = vld [vmem:[%s1826_s10 + $0x18] sm:$0xff] }
  0x2a   :  { %662 = vmatpush.bf16.msrb.mxu0 %v1382_v45  ;;  %v1411_v14 = vld [vmem:[%s1816_s0] sm:$0xff] }
  0x2b   :  { %675 = vmatpush.bf16.msrb.mxu1 %v1390_v46  ;;  %v1409_v16 = vld [vmem:[%s1821_s5] sm:$0xff] }
  0x2c   :  { %688 = vmatpush.bf16.msrb.mxu2 %v1398_v47  ;;  %v59_v20 = vld [vmem:[%s1819_s3] sm:$0x3] }
  0x2d   :  { %701 = vmatpush.bf16.msrb.mxu3 %v1406_v48  ;;  %71 = vperm.xlu1 %1424, %v59_v20   ;;  %v1426_v43 = vld [vmem:[%s1823_s7] ss:$0 sm:$0xff] }
  0x2e   :  { %663 = vmatpush.bf16.msrb.mxu0 %v1381_v49  ;;  %v1427_v44 = vld [vmem:[%s1825_s9] ss:$0 sm:$0xff] }
  0x2f   :  { %676 = vmatpush.bf16.msrb.mxu1 %v1389_v50  ;;  %v1428_v46 = vld [vmem:[%s1824_s8] ss:$0 sm:$0xff]  ;;  %v1429_v50 = vld [vmem:[%s1824_s8 + $0x1] ss:$0 sm:$0xff] }
  0x30   :  { %689 = vmatpush.bf16.msrb.mxu2 %v1397_v51  ;;  %63 = vperm.xlu0 %1423, %v59_v20   ;;  %v1416_v20 = vld [vmem:[%s1826_s10 + $0x10] sm:$0xff] }
  0x31   :  { %702 = vmatpush.bf16.msrb.mxu3 %v1405_v52 }
  0x32   :  { %664 = vmatpush.bf16.msrb.mxu0 %v1380_v53 }
  0x33   :  { %677 = vmatpush.bf16.msrb.mxu1 %v1388_v54 }
  0x34   :  { %690 = vmatpush.bf16.msrb.mxu2 %v1396_v55 }
  0x35   :  { %703 = vmatpush.bf16.msrb.mxu3 %v1404_v56 }
  0x36   :  { %665 = vmatpush.bf16.msrb.mxu0 %v1379_v57 }
  0x37   :  { %678 = vmatpush.bf16.msrb.mxu1 %v1387_v58 }
  0x38   :  { %691 = vmatpush.bf16.msrb.mxu2 %v1395_v59  ;;  %1425 = vset.pattern.permute.xlu0 %v1466_v23 }
  0x39   :  { %704 = vmatpush.bf16.msrb.mxu3 %v1403_v60 }
  0x3a   :  { %666 = vmatpush.bf16.msrb.mxu0 %v1378_v61 }
  0x3b   :  { %679 = vmatpush.bf16.msrb.mxu1 %v1386_v62 }
  0x3c   :  { %692 = vmatpush.bf16.msrb.mxu2 %v1394_v63 }
  0x3d   :  { %705 = vmatpush.bf16.msrb.mxu3 %v1402_v0 }
  0x3e   :  { %667 = vmatpush.bf16.msrb.mxu0 %v1377_v1 }
  0x3f   :  { %680 = vmatpush.bf16.msrb.mxu1 %v1385_v2 }
  0x40   :  { %693 = vmatpush.bf16.msrb.mxu2 %v1393_v3 }
  0x41   :  { %706 = vmatpush.bf16.msrb.mxu3 %v1401_v4  ;;  %668 = vmatmul.bf16.vlgmr.msrb.gmra.mxu0 %v212_v5 }
  0x42   :  { %681 = vmatmul.bf16.vlgmr.msrb.gmra.mxu1 %v213_v6  ;;  %739 = vmatpush.bf16.msra.mxu0 %v1410_v10 }
  0x43   :  { %694 = vmatmul.bf16.vlgmr.msrb.gmra.mxu2 %v214_v7  ;;  %779 = vmatpush.bf16.msra.mxu1 %v1413_v9 }
  0x44   :  { %707 = vmatmul.bf16.vlgmr.msrb.gmra.mxu3 %v215_v8  ;;  %928 = vmatpush.bf16.msra.mxu2 %v1417_v13 }
  0x46   :  { %740 = vmatpush.bf16.msra.mxu0 %v1409_v16 }
  0x47   :  { %780 = vmatpush.bf16.msra.mxu1 %v1412_v11 }
  0x48   :  { %929 = vmatpush.bf16.msra.mxu2 %v1416_v20 }
  0x52   :  { %1323 = vmatmul.msk.bf16.vlgmr.msra.gmra.mxu1 %vm729_vm0, %v1411_v14 }
  0x9a   :  { %v48_v42 = vpop.permute.xlu0 %47 }
  0x9b   :  { %v53_v45 = vmul.f32 %v1426_v43, %v48_v42 }
  0x9d   :  { %v58_v48 = vadd.f32 %v1427_v44, %v53_v45 }
  0x9e   :  { %v617_v15 = vpop.f32.mrf.mxu0 }
  0x9f   :  { %v630_v17 = vpop.f32.mrf.mxu1  ;;  %v72_v51 = vpop.permute.xlu1 %71 }
  0xa0   :  { %v631_v26 = vadd.f32 %v630_v17, %v617_v15  ;;  %v75_v53 = vmul.f32 %v1429_v50, %v72_v51 }
  0xa2   :  { %v64_v47 = vpop.permute.xlu0 %63 }
  0xa3   :  { %v67_v49 = vmul.f32 %v1428_v46, %v64_v47 }
  0xa5   :  { %v68_v52 = vadd.f32 %v67_v49, %v58_v48 }
  0xa6   :  { %v643_v18 = vpop.f32.mrf.mxu2  ;;  %v619_v21 = vpop.f32.mrf.mxu0 }
  0xa7   :  { %v656_v19 = vpop.f32.mrf.mxu3  ;;  %v632_v22 = vpop.f32.mrf.mxu1  ;;  %v644_v27 = vadd.f32 %v643_v18, %v631_v26  ;;  %v76_v55 = vadd.f32 %v75_v53, %v68_v52 }
  0xa9   :  { %v657_v28 = vadd.f32 %v656_v19, %v644_v27  ;;  %v1415_v27 = vld [vmem:[%s1826_s10 + $0x8] sm:$0xff] }
  0xaa   :  { %930 = vmatpush.bf16.msra.mxu2 %v1415_v27 }
  0xae   :  { %v645_v24 = vpop.f32.mrf.mxu2 }
  0xaf   :  { %v658_v25 = vpop.f32.mrf.mxu3 }
  0xbe   :  { %v669_v29 = vpop.f32.mrf.mxu0 }
  0xbf   :  { %v682_v30 = vpop.f32.mrf.mxu1  ;;  %v670_v31 = vadd.f32 %v669_v29, %v657_v28 }
  0xc1   :  { %v683_v32 = vadd.f32 %v682_v30, %v670_v31 }
  0xc6   :  { %v695_v33 = vpop.f32.mrf.mxu2  ;;  %v671_v36 = vpop.f32.mrf.mxu0 }
  0xc7   :  { %v708_v34 = vpop.f32.mrf.mxu3  ;;  %v696_v35 = vadd.f32 %v695_v33, %v683_v32  ;;  %v684_v37 = vpop.f32.mrf.mxu1 }
  0xc9   :  { %v709_v38 = vadd.f32 %v708_v34, %v696_v35  ;;  %v1414_v34 = vld [vmem:[%s1826_s10] sm:$0xff] }
  0xca   :  { %931 = vmatpush.bf16.msra.mxu2 %v1414_v34 }
  0xcb   :  { %v712_v39 = vpack.c.bf16 %v709_v38, %v709_v38 }
  0xcd   :  { %1310 = vmatmul.msk.bf16.vlgmr.msra.gmra.mxu0 %vm729_vm0, %v712_v39 }
  0xce   :  { %v697_v40 = vpop.f32.mrf.mxu2 }
  0xcf   :  { %v710_v41 = vpop.f32.mrf.mxu3  ;;  %v782_v54 = vpop.f32.mrf.mxu1 }
  0xd7   :  { %v784_v62 = vpop.f32.mrf.mxu1 }
 0x14a   :  { %v742_v56 = vpop.f32.mrf.mxu0 }
 0x14b   :  { %v746_v57 = vadd.f32 %v742_v56, %v76_v55 }
 0x14d   :  { %v788_v58 = vrot.slane %v746_v57, 1  ;;  %v789_v59 = vperm.slane %v746_v57, 0 }
 0x14f   :  { %v790_v60 = vperm.slane %v788_v58, 0  ;;  %v1765_v61 = vadd.f32 %v789_v59, %v782_v54 }
 0x151   :  { %v1767_v63 = vadd.f32 %v790_v60, %v784_v62  ;;  %v1770_v0 = vmul.f32 0.70710677, %v1765_v61 }
 0x152   :  { %v744_v1 = vpop.f32.mrf.mxu0 }
 0x153   :  { %v1773_v2 = vmul.f32 0.70710677, %v1767_v63  ;;  %v799_v3 = vmul.f32 %v1770_v0, %v1770_v0 }
 0x155   :  { %v800_v4 = vmin.f32 %v799_v3, 16.0  ;;  %v839_v5 = vmul.f32 %v1773_v2, %v1773_v2 }
 0x157   :  { %v801_v6 = vmul.f32 2.1237322e-06, %v800_v4  ;;  %v812_v7 = vmul.f32 3.8918573e-05, %v800_v4  ;;  %v840_v8 = vmin.f32 %v839_v5, 16.0 }
 0x159   :  { %v802_v9 = vadd.f32 0.00028619796, %v801_v6  ;;  %v813_v10 = vadd.f32 0.001143296, %v812_v7  ;;  %v841_v11 = vmul.f32 2.1237322e-06, %v840_v8 }
 0x15a   :  { %v852_v12 = vmul.f32 3.8918573e-05, %v840_v8 }
 0x15b   :  { %v803_v14 = vmul.f32 %v802_v9, %v800_v4  ;;  %v814_v15 = vmul.f32 %v813_v10, %v800_v4  ;;  %v842_v16 = vadd.f32 0.00028619796, %v841_v11 }
 0x15c   :  { %v853_v17 = vadd.f32 0.001143296, %v852_v12 }
 0x15d   :  { %v815_v18 = vadd.f32 0.014752088, %v814_v15  ;;  %v843_v19 = vmul.f32 %v842_v16, %v840_v8  ;;  %v804_v21 = vadd.f32 0.0036580483, %v803_v14 }
 0x15e   :  { %v854_v22 = vmul.f32 %v853_v17, %v840_v8 }
 0x15f   :  { %v816_v23 = vmul.f32 %v815_v18, %v800_v4  ;;  %v844_v24 = vadd.f32 0.0036580483, %v843_v19  ;;  %v805_v28 = vmul.f32 %v804_v21, %v800_v4  ;;  %v795_v18 = vmul.f32 0.5, %v1765_v61 }
 0x160   :  { %v855_v25 = vadd.f32 0.014752088, %v854_v22 }
 0x161   :  { %v817_v26 = vadd.f32 0.112945676, %v816_v23  ;;  %v845_v31 = vmul.f32 %v844_v24, %v840_v8  ;;  %v806_v35 = vadd.f32 0.05243302, %v805_v28 }
 0x162   :  { %v856_v29 = vmul.f32 %v855_v25, %v840_v8 }
 0x163   :  { %v818_v30 = vmul.f32 %v817_v26, %v800_v4  ;;  %v846_v38 = vadd.f32 0.05243302, %v845_v31  ;;  %v807_v41 = vmul.f32 %v806_v35, %v800_v4 }
 0x164   :  { %v857_v32 = vadd.f32 0.112945676, %v856_v29 }
 0x165   :  { %v819_v33 = vadd.f32 0.4994258, %v818_v30  ;;  %v847_v43 = vmul.f32 %v846_v38, %v840_v8  ;;  %v808_v45 = vadd.f32 0.18741608, %v807_v41 }
 0x166   :  { %v858_v36 = vmul.f32 %v857_v32, %v840_v8 }
 0x167   :  { %v820_v37 = vmul.f32 %v819_v33, %v800_v4  ;;  %v848_v46 = vadd.f32 0.18741608, %v847_v43  ;;  %v809_v48 = vmul.f32 %v808_v45, %v800_v4 }
 0x168   :  { %v859_v39 = vadd.f32 0.4994258, %v858_v36 }
 0x169   :  { %v821_v40 = vadd.f32 1.0, %v820_v37  ;;  %v849_v52 = vmul.f32 %v848_v46, %v840_v8  ;;  %v810_v55 = vadd.f32 1.1283791, %v809_v48 }
 0x16a   :  { %v860_v42 = vmul.f32 %v859_v39, %v840_v8 }
 0x16b   :  { %1431 = vrcp.f32 %v821_v40  ;;  %v833_v53 = vand.u32 2147483648, %v821_v40  ;;  %v831_v57 = vand.u32 2147483647, %v821_v40  ;;  %vm827_vm2 = vweird.f32 %v821_v40 }
 0x16c   :  { %v861_v44 = vadd.f32 1.0, %v860_v42  ;;  %v850_v60 = vadd.f32 1.1283791, %v849_v52  ;;  %v811_v5 = vmul.f32 %v810_v55, %v1770_v0  ;;  %v796_v0 = vmul.f32 0.5, %v1767_v63 }
 0x16d   :  { %v834_v1 = vor.u32 1.1754944e-38, %v833_v53  ;;  %vm832_vm5 = vcmp.eq.f32.partialorder %v831_v57, 8.507059e+37 }
 0x16e   :  { %1433 = vrcp.f32 %v861_v44  ;;  %v873_v62 = vand.u32 2147483648, %v861_v44  ;;  %v871_v4 = vand.u32 2147483647, %v861_v44  ;;  %vm867_vm6 = vweird.f32 %v861_v44 }
 0x16f   :  { %v851_v11 = vmul.f32 %v850_v60, %v1773_v2  ;;  %v1430_v2 = vld [vmem:[%s1827_s11] ss:$0 sm:$0xff]  ;;  %s1467_s11 = smov [#allocation2]  }
 0x170   :  { %v874_v10 = vor.u32 1.1754944e-38, %v873_v62  ;;  %vm872_vm8 = vcmp.eq.f32.partialorder %v871_v4, 8.507059e+37  ;;  %s1032_s23 = sshll.u32 %s1467_s11, 4  ;;  %s1033_s23 = int_to_ptr.vmem [resolvable:$true] %s1032_s23 }
 0x171   :  { %v1432_v47 = vpop.eup %1431 }
 0x172   :  { %v823_v49 = vmul.f32 %v1432_v47, %v821_v40  ;;  %vm828_vm1 = vweird.f32 %v1432_v47 }
 0x173   :  { %vm829_vm3 = vmor %vm827_vm2, %vm828_vm1 }
 0x174   :  { %v1434_v50 = vpop.eup %1433  ;;  %v824_v51 = vsub.f32 1.0, %v823_v49 }
 0x175   :  { %v863_v54 = vmul.f32 %v1434_v50, %v861_v44  ;;  %vm868_vm4 = vweird.f32 %v1434_v50 }
 0x176   :  { %v825_v56 = vmul.f32 %v1432_v47, %v824_v51  ;;  %vm869_vm7 = vmor %vm867_vm6, %vm868_vm4 }
 0x177   :  { %v864_v58 = vsub.f32 1.0, %v863_v54 }
 0x178   :  { %v826_v59 = vadd.f32 %v1432_v47, %v825_v56 }
 0x179   :  { %v865_v3 = vmul.f32 %v1434_v50, %v864_v58 }
 0x17a   :  { %v830_v6 = vsel %vm829_vm3, %v1432_v47, %v826_v59 }
 0x17b   :  { %v835_v7 = vsel %vm832_vm5, %v834_v1, %v830_v6  ;;  %v866_v8 = vadd.f32 %v1434_v50, %v865_v3 }
 0x17c   :  { %v836_v9 = vmul.f32 %v835_v7, %v811_v5 }
 0x17d   :  { %v870_v12 = vsel %vm869_vm7, %v1434_v50, %v866_v8 }
 0x17e   :  { %v1324_v13 = vclamps-f32 %v836_v9, 1.0  ;;  %v875_v14 = vsel %vm872_vm8, %v874_v10, %v870_v12 }
 0x17f   :  { %v876_v15 = vmul.f32 %v875_v14, %v851_v11 }
 0x180   :  { %v879_v17 = vadd.f32 1.0, %v1324_v13 }
 0x181   :  { %v1325_v16 = vclamps-f32 %v876_v15, 1.0 }
 0x182   :  { %v881_v20 = vmul.f32 %v879_v17, %v795_v18 }
 0x183   :  { %v880_v19 = vadd.f32 1.0, %v1325_v16 }
 0x185   :  { %v882_v21 = vmul.f32 %v880_v19, %v796_v0 }
 0x187   :  { %v883_v22 = vpack.c.bf16 %v882_v21, %v881_v20 }
 0x189   :  { %1342 = vmatmul.msk.bf16.vlgmr.msra.gmra.mxu2 %vm920_vm9, %v883_v22 }
 0x20c   :  { %v933_v23 = vpop.f32.mrf.mxu2 }
 0x20d   :  { %v1798_v24 = vadd.f32 %v1430_v2, %v933_v23 }
 0x20f   :  { %v940_v25 = vmul.f32 0.70710677, %v1798_v24 }
 0x211   :  { %v942_v26 = vmul.f32 %v940_v25, %v940_v25 }
 0x213   :  { %v943_v27 = vmin.f32 %v942_v26, 16.0 }
 0x214   :  { %v935_v61 = vpop.f32.mrf.mxu2 }
 0x215   :  { %v944_v28 = vmul.f32 2.1237322e-06, %v943_v27  ;;  %v955_v63 = vmul.f32 3.8918573e-05, %v943_v27  ;;  %v1801_v29 = vadd.f32 %v1430_v2, %v935_v61 }
 0x217   :  { %v945_v30 = vadd.f32 0.00028619796, %v944_v28  ;;  %v956_v31 = vadd.f32 0.001143296, %v955_v63  ;;  %v1804_v32 = vmul.f32 0.70710677, %v1801_v29 }
 0x218   :  { %v938_v63 = vmul.f32 0.5, %v1798_v24  ;;  %v939_v24 = vmul.f32 0.5, %v1801_v29 }
 0x219   :  { %v946_v33 = vmul.f32 %v945_v30, %v943_v27  ;;  %v957_v34 = vmul.f32 %v956_v31, %v943_v27  ;;  %v982_v35 = vmul.f32 %v1804_v32, %v1804_v32 }
 0x21b   :  { %v958_v36 = vadd.f32 0.014752088, %v957_v34  ;;  %v947_v37 = vadd.f32 0.0036580483, %v946_v33  ;;  %v983_v38 = vmin.f32 %v982_v35, 16.0 }
 0x21d   :  { %v959_v39 = vmul.f32 %v958_v36, %v943_v27  ;;  %v984_v40 = vmul.f32 2.1237322e-06, %v983_v38  ;;  %v995_v41 = vmul.f32 3.8918573e-05, %v983_v38  ;;  %v948_v43 = vmul.f32 %v947_v37, %v943_v27 }
 0x21f   :  { %v960_v42 = vadd.f32 0.112945676, %v959_v39  ;;  %v985_v44 = vadd.f32 0.00028619796, %v984_v40  ;;  %v996_v45 = vadd.f32 0.001143296, %v995_v41 }
 0x220   :  { %v949_v50 = vadd.f32 0.05243302, %v948_v43 }
 0x221   :  { %v961_v46 = vmul.f32 %v960_v42, %v943_v27  ;;  %v986_v47 = vmul.f32 %v985_v44, %v983_v38  ;;  %v997_v48 = vmul.f32 %v996_v45, %v983_v38 }
 0x222   :  { %v950_v56 = vmul.f32 %v949_v50, %v943_v27 }
 0x223   :  { %v962_v49 = vadd.f32 0.4994258, %v961_v46  ;;  %v998_v51 = vadd.f32 0.014752088, %v997_v48  ;;  %v987_v53 = vadd.f32 0.0036580483, %v986_v47 }
 0x224   :  { %v951_v60 = vadd.f32 0.18741608, %v950_v56 }
 0x225   :  { %v963_v52 = vmul.f32 %v962_v49, %v943_v27  ;;  %v999_v54 = vmul.f32 %v998_v51, %v983_v38  ;;  %v988_v58 = vmul.f32 %v987_v53, %v983_v38 }
 0x226   :  { %v952_v5 = vmul.f32 %v951_v60, %v943_v27 }
 0x227   :  { %v964_v55 = vadd.f32 1.0, %v963_v52  ;;  %v1000_v57 = vadd.f32 0.112945676, %v999_v54  ;;  %v989_v1 = vadd.f32 0.05243302, %v988_v58 }
 0x228   :  { %v953_v11 = vadd.f32 1.1283791, %v952_v5 }
 0x229   :  { %1435 = vrcp.f32 %v964_v55  ;;  %v1001_v59 = vmul.f32 %v1000_v57, %v983_v38  ;;  %v990_v8 = vmul.f32 %v989_v1, %v983_v38  ;;  %v976_v10 = vand.u32 2147483648, %v964_v55 }
 0x22a   :  { %v974_v13 = vand.u32 2147483647, %v964_v55  ;;  %vm970_vm11 = vweird.f32 %v964_v55  ;;  %v954_v18 = vmul.f32 %v953_v11, %v940_v25 }
 0x22b   :  { %v1002_v62 = vadd.f32 0.4994258, %v1001_v59  ;;  %v991_v14 = vadd.f32 0.18741608, %v990_v8  ;;  %v977_v16 = vor.u32 1.1754944e-38, %v976_v10 }
 0x22c   :  { %vm975_vm13 = vcmp.eq.f32.partialorder %v974_v13, 8.507059e+37 }
 0x22d   :  { %v1003_v3 = vmul.f32 %v1002_v62, %v983_v38  ;;  %v992_v20 = vmul.f32 %v991_v14, %v983_v38 }
 0x22f   :  { %v1436_v4 = vpop.eup %1435  ;;  %v1004_v7 = vadd.f32 1.0, %v1003_v3  ;;  %v993_v27 = vadd.f32 1.1283791, %v992_v20 }
 0x230   :  { %v966_v6 = vmul.f32 %v1436_v4, %v964_v55  ;;  %vm971_vm10 = vweird.f32 %v1436_v4 }
 0x231   :  { %1437 = vrcp.f32 %v1004_v7  ;;  %vm972_vm12 = vmor %vm970_vm11, %vm971_vm10  ;;  %v1016_v26 = vand.u32 2147483648, %v1004_v7  ;;  %v1014_v28 = vand.u32 2147483647, %v1004_v7  ;;  %vm1010_vm15 = vweird.f32 %v1004_v7 }
 0x232   :  { %v967_v9 = vsub.f32 1.0, %v966_v6  ;;  %v994_v34 = vmul.f32 %v993_v27, %v1804_v32 }
 0x233   :  { %v1017_v25 = vor.u32 1.1754944e-38, %v1016_v26  ;;  %vm1015_vm2 = vcmp.eq.f32.partialorder %v1014_v28, 8.507059e+37 }
 0x234   :  { %v968_v12 = vmul.f32 %v1436_v4, %v967_v9 }
 0x236   :  { %v969_v15 = vadd.f32 %v1436_v4, %v968_v12 }
 0x237   :  { %v1438_v17 = vpop.eup %1437 }
 0x238   :  { %v973_v0 = vsel %vm972_vm12, %v1436_v4, %v969_v15  ;;  %v1006_v21 = vmul.f32 %v1438_v17, %v1004_v7  ;;  %vm1011_vm14 = vweird.f32 %v1438_v17 }
 0x239   :  { %v978_v19 = vsel %vm975_vm13, %v977_v16, %v973_v0  ;;  %vm1012_vm1 = vmor %vm1010_vm15, %vm1011_vm14 }
 0x23a   :  { %v979_v22 = vmul.f32 %v978_v19, %v954_v18  ;;  %v1007_v2 = vsub.f32 1.0, %v1006_v21 }
 0x23c   :  { %v1343_v23 = vclamps-f32 %v979_v22, 1.0  ;;  %v1008_v61 = vmul.f32 %v1438_v17, %v1007_v2 }
 0x23e   :  { %v1022_v30 = vadd.f32 1.0, %v1343_v23  ;;  %v1009_v31 = vadd.f32 %v1438_v17, %v1008_v61 }
 0x240   :  { %v1024_v33 = vmul.f32 %v1022_v30, %v938_v63  ;;  %v1013_v35 = vsel %vm1012_vm1, %v1438_v17, %v1009_v31 }
 0x241   :  { %v1018_v36 = vsel %vm1015_vm2, %v1017_v25, %v1013_v35 }
 0x242   :  { %1026 = vst.msk [vmem:[#allocation2] sm:$0xff] %vm729_vm0, %v1024_v33  ;;  %v1019_v37 = vmul.f32 %v1018_v36, %v994_v34 }
 0x244   :  { %v1344_v38 = vclamps-f32 %v1019_v37, 1.0 }
 0x246   :  { %v1023_v39 = vadd.f32 1.0, %v1344_v38 }
 0x248   :  { %v1025_v40 = vmul.f32 %v1023_v39, %v939_v24 }
 0x24a   :  { %1027 = vst.msk [vmem:[#allocation2 + $0x8] sm:$0xff] %vm729_vm0, %v1025_v40 }
 0x24b   :  { %1040 = dma.vmem_to_hbm [thread:$0]  %s1033_s23, 256, %s1035_s25, [#allocation3], %s1468_s26, %s1468_s26, %s1469_s1  }
 0x24c   :  { %1463 = dma.done.wait [#allocation3], 256  }
 0x24d   :  { %1464 = vsyncadd [#allocation3], 4294967040 }
 0x24e   :  { %1045 = vsyncpa [#allocation3], 1 }

</bundles_post_ra>
